<compile_context>
chip_gen: v5e
topology: v5e:2x2
jax: 0.10.0
libtpu: 0.0.40
codegen_flags: <defaults>
</compile_context>

<pallas_src>
import functools
import math

import jax
import jax.numpy as jnp
from jax.experimental import pallas as pl
from jax.experimental.pallas import tpu as pltpu


MXU_DTYPE = jnp.bfloat16     # MXU operand dtype; accumulation is always f32
LN_EPS = 1e-5                # PyTorch LayerNorm default


def _vmem_limit_bytes():
    """Generation-aware scoped-VMEM budget (half of physical, clamped)."""
    default = 32 * 1024 * 1024
    try:
        info = pltpu.get_tpu_info()
        cap = getattr(info, "vmem_capacity_bytes", None)
        if not cap:
            cap = getattr(info, "vmem_size_bytes", None)
        if cap:
            return int(max(default, min(cap // 2, 96 * 1024 * 1024)))
    except Exception:
        pass
    return default


VMEM_LIMIT = _vmem_limit_bytes()
# Bigger row tiles when the budget allows (v5e/v6e 128 MiB); modest on v7x.
ROW_TILE = 512 if VMEM_LIMIT >= 64 * 1024 * 1024 else 256


def _cparams(*dims):
    return pltpu.CompilerParams(dimension_semantics=dims,
                                vmem_limit_bytes=VMEM_LIMIT)


def _fits_resident(n_bytes):
    """True if a double-buffered weight block of n_bytes fits comfortably."""
    return 2 * n_bytes <= VMEM_LIMIT // 3


def _sublane_tile(dim, target):
    """Largest multiple-of-8 divisor of `dim` <= target (or the full dim)."""
    if dim <= target:
        return dim
    t = (target // 8) * 8
    while t >= 8:
        if dim % t == 0:
            return t
        t -= 8
    # TODO(synk): pad + edge-mask ragged shapes instead of full-dim fallback.
    return dim


def _lane_tile(dim, target):
    """Largest multiple-of-128 divisor of `dim` <= target (or the full dim)."""
    if dim <= target:
        return dim
    t = (target // 128) * 128
    while t >= 128:
        if dim % t == 0:
            return t
        t -= 128
    # TODO(synk): pad + edge-mask ragged shapes instead of full-dim fallback.
    return dim


def _layernorm(x, g, b):
    mu = jnp.mean(x, axis=-1, keepdims=True)
    var = jnp.mean(jnp.square(x - mu), axis=-1, keepdims=True)
    return (x - mu) * jax.lax.rsqrt(var + LN_EPS) * g + b


def _gelu(x):
    # tanh-approx GELU (GPT-2 style).
    # TODO(synk): switch to exact erf GELU if the reference GPT2Model uses nn.GELU().
    c = 0.7978845608028654  # sqrt(2/pi)
    return 0.5 * x * (1.0 + jnp.tanh(c * (x + 0.044715 * x * x * x)))


# ----------------------------------------------------------------------------
# Kernel: read_in linear (VPU rank-1 updates, K=d_in is tiny) + bias + wpe add
# ----------------------------------------------------------------------------
def _read_in_kernel(z_ref, w_ref, b_ref, wpe_ref, o_ref):
    z = z_ref[0].astype(jnp.float32)                       # [T, d_in]
    w = w_ref[...].astype(jnp.float32)                     # [d_in, E]
    acc = b_ref[...] + wpe_ref[...]                        # [T, E]
    d_in = z.shape[1]
    for k in range(d_in):                                  # static, d_in is tiny
        acc = acc + z[:, k:k + 1] * w[k:k + 1, :]          # VPU broadcast-FMA
    o_ref[0] = acc.astype(o_ref.dtype)


def read_in(zs, w, b, wpe):
    """zs: [B, T, d_in], w: [d_in, E], b: [1, E], wpe: [T, E] -> [B, T, E]."""
    B, T, d = zs.shape
    E = w.shape[1]
    return pl.pallas_call(
        _read_in_kernel,
        out_shape=jax.ShapeDtypeStruct((B, T, E), jnp.float32),
        grid=(B,),
        in_specs=[
            pl.BlockSpec((1, T, d), lambda b_: (b_, 0, 0)),
            pl.BlockSpec((d, E), lambda b_: (0, 0)),
            pl.BlockSpec((1, E), lambda b_: (0, 0)),
            pl.BlockSpec((T, E), lambda b_: (0, 0)),
        ],
        out_specs=pl.BlockSpec((1, T, E), lambda b_: (b_, 0, 0)),
        compiler_params=_cparams("parallel"),
    )(zs, w, b, wpe)


# ----------------------------------------------------------------------------
# Kernel: LayerNorm fused with a linear (LN1 -> QKV projection).
# LN(x) is cached in VMEM and reused across column tiles of the same row tile.
# ----------------------------------------------------------------------------
def _ln_linear_kernel(x_ref, g_ref, lb_ref, w_ref, b_ref, o_ref, xn_ref):
    j = pl.program_id(1)

    @pl.when(j == 0)
    def _():
        xn_ref[...] = _layernorm(x_ref[...].astype(jnp.float32),
                                 g_ref[...], lb_ref[...])

    acc = jnp.dot(xn_ref[...].astype(MXU_DTYPE), w_ref[...].astype(MXU_DTYPE),
                  preferred_element_type=jnp.float32)
    o_ref[...] = (acc + b_ref[...]).astype(o_ref.dtype)


def ln_linear(x, g, lb, w, b, out_dtype):
    """LayerNorm(x) @ w + b.  Weight held fully resident when it fits VMEM."""
    M, K = x.shape
    N = w.shape[1]
    tm = _sublane_tile(M, ROW_TILE)
    tn = N if _fits_resident(K * N * w.dtype.itemsize) else _lane_tile(N, 512)
    return pl.pallas_call(
        _ln_linear_kernel,
        out_shape=jax.ShapeDtypeStruct((M, N), out_dtype),
        grid=(M // tm, N // tn),
        in_specs=[
            pl.BlockSpec((tm, K), lambda i, j: (i, 0)),
            pl.BlockSpec((1, K), lambda i, j: (0, 0)),
            pl.BlockSpec((1, K), lambda i, j: (0, 0)),
            pl.BlockSpec((K, tn), lambda i, j: (0, j)),
            pl.BlockSpec((1, tn), lambda i, j: (0, j)),
        ],
        out_specs=pl.BlockSpec((tm, tn), lambda i, j: (i, j)),
        scratch_shapes=[pltpu.VMEM((tm, K), jnp.float32)],   # cached LN(x)
        compiler_params=_cparams("parallel", "arbitrary"),
    )(x, g, lb, w, b)


# ----------------------------------------------------------------------------
# Kernel: causal attention (all heads) fused with the output projection and
# residual add.  Consumes the [B, T, 3E] bf16 QKV slab; K/V stay resident per
# batch while query tiles stream; one lane-dense [tq, E] store per step.
# ----------------------------------------------------------------------------
def _attn_proj_res_kernel(q_ref, kv_ref, pw_ref, pb_ref, res_ref, o_ref,
                          att_ref, *, n_head):
    tq = q_ref.shape[1]
    T = kv_ref.shape[1]
    E = kv_ref.shape[2] // 3
    hd = E // n_head
    scale = 1.0 / math.sqrt(hd)
    qi = pl.program_id(1)

    qblk = q_ref[0]                                         # [tq, 3E] bf16
    kvblk = kv_ref[0]                                       # [T, 3E]  bf16
    row = jax.lax.broadcasted_iota(jnp.int32, (tq, T), 0) + qi * tq
    col = jax.lax.broadcasted_iota(jnp.int32, (tq, T), 1)
    causal = col <= row

    # TODO(synk): pack head pairs (hd=64) into 128-lane MXU blocks for full
    # systolic-depth utilization on v6e/v7x.
    for h in range(n_head):                                 # static unroll over heads
        q = qblk[:, h * hd:(h + 1) * hd].astype(MXU_DTYPE)
        k = kvblk[:, E + h * hd:E + (h + 1) * hd].astype(MXU_DTYPE)
        v = kvblk[:, 2 * E + h * hd:2 * E + (h + 1) * hd].astype(MXU_DTYPE)
        # QK^T without materializing k.T (MXU consumes the transposed operand)
        s = jax.lax.dot_general(q, k, (((1,), (1,)), ((), ())),
                                preferred_element_type=jnp.float32) * scale
        s = jnp.where(causal, s, -1e30)
        m = jnp.max(s, axis=-1, keepdims=True)
        p = jnp.exp(s - m)
        inv = pl.reciprocal(jnp.sum(p, axis=-1, keepdims=True), approx=True)
        o_h = jnp.dot(p.astype(MXU_DTYPE), v, preferred_element_type=jnp.float32)
        att_ref[:, h * hd:(h + 1) * hd] = o_h * inv         # bounded live range

    proj = jnp.dot(att_ref[...].astype(MXU_DTYPE), pw_ref[...].astype(MXU_DTYPE),
                   preferred_element_type=jnp.float32)
    o_ref[0] = (proj + pb_ref[...]
                + res_ref[0].astype(jnp.float32)).astype(o_ref.dtype)


def attn_proj_residual(qkv, pw, pb, res, n_head, *, tq=256):
    """res + Attention(qkv) @ pw + pb.
    qkv: [B, T, 3E] bf16 (Q|K|V), res: [B, T, E] f32 -> [B, T, E] f32."""
    B, T, threeE = qkv.shape
    E = threeE // 3
    tq = _sublane_tile(T, tq)
    return pl.pallas_call(
        functools.partial(_attn_proj_res_kernel, n_head=n_head),
        out_shape=jax.ShapeDtypeStruct((B, T, E), res.dtype),
        grid=(B, T // tq),
        in_specs=[
            pl.BlockSpec((1, tq, threeE), lambda b_, q_: (b_, q_, 0)),  # Q rows
            pl.BlockSpec((1, T, threeE), lambda b_, q_: (b_, 0, 0)),    # full K/V
            pl.BlockSpec((E, E), lambda b_, q_: (0, 0)),
            pl.BlockSpec((1, E), lambda b_, q_: (0, 0)),
            pl.BlockSpec((1, tq, E), lambda b_, q_: (b_, q_, 0)),
        ],
        out_specs=pl.BlockSpec((1, tq, E), lambda b_, q_: (b_, q_, 0)),
        scratch_shapes=[pltpu.VMEM((tq, E), jnp.float32)],
        compiler_params=_cparams("parallel", "parallel"),
    )(qkv, qkv, pw, pb, res)


# ----------------------------------------------------------------------------
# Kernel: LN2 + fc1 + GELU + fc2 + residual.  The 4E hidden dim is either a
# single resident block (v5e/v6e budgets) or the 'arbitrary' grid axis.
# ----------------------------------------------------------------------------
def _ln_mlp_res_kernel(x_ref, g_ref, lb_ref, w1_ref, b1_ref, w2_ref, b2_ref,
                       o_ref, xn_ref, acc_ref):
    k = pl.program_id(1)

    @pl.when(k == 0)
    def _():
        xn_ref[...] = _layernorm(x_ref[...].astype(jnp.float32),
                                 g_ref[...], lb_ref[...])
        acc_ref[...] = jnp.zeros_like(acc_ref)

    h = jnp.dot(xn_ref[...].astype(MXU_DTYPE), w1_ref[...].astype(MXU_DTYPE),
                preferred_element_type=jnp.float32) + b1_ref[...]
    h = _gelu(h)
    acc_ref[...] += jnp.dot(h.astype(MXU_DTYPE), w2_ref[...].astype(MXU_DTYPE),
                            preferred_element_type=jnp.float32)

    @pl.when(k == pl.num_programs(1) - 1)
    def _():
        o_ref[...] = (x_ref[...].astype(jnp.float32) + acc_ref[...]
                      + b2_ref[...]).astype(o_ref.dtype)


def ln_mlp_residual(x, g, lb, w1, b1, w2, b2):
    """x + GELU(LayerNorm(x) @ w1 + b1) @ w2 + b2; the [M, 4E] intermediate is
    never written to HBM."""
    M, E = x.shape
    H4 = w1.shape[1]
    tm = _sublane_tile(M, ROW_TILE)
    w_bytes = (w1.size * w1.dtype.itemsize) + (w2.size * w2.dtype.itemsize)
    th = H4 if _fits_resident(w_bytes) else _lane_tile(H4, 512)
    return pl.pallas_call(
        _ln_mlp_res_kernel,
        out_shape=jax.ShapeDtypeStruct((M, E), x.dtype),
        grid=(M // tm, H4 // th),
        in_specs=[
            pl.BlockSpec((tm, E), lambda i, k: (i, 0)),
            pl.BlockSpec((1, E), lambda i, k: (0, 0)),
            pl.BlockSpec((1, E), lambda i, k: (0, 0)),
            pl.BlockSpec((E, th), lambda i, k: (0, k)),
            pl.BlockSpec((1, th), lambda i, k: (0, k)),
            pl.BlockSpec((th, E), lambda i, k: (k, 0)),
            pl.BlockSpec((1, E), lambda i, k: (0, 0)),
        ],
        out_specs=pl.BlockSpec((tm, E), lambda i, k: (i, 0)),
        scratch_shapes=[pltpu.VMEM((tm, E), jnp.float32),   # cached LN(x)
                        pltpu.VMEM((tm, E), jnp.float32)],  # f32 accumulator
        compiler_params=_cparams("parallel", "arbitrary"),
    )(x, g, lb, w1, b1, w2, b2)


# ----------------------------------------------------------------------------
# Kernel: final LayerNorm fused with the [E, 1] read_out head (VPU dot-reduce)
# ----------------------------------------------------------------------------
def _ln_readout_kernel(x_ref, g_ref, lb_ref, w_ref, b_ref, o_ref):
    xn = _layernorm(x_ref[...].astype(jnp.float32), g_ref[...], lb_ref[...])
    y = jnp.sum(xn * w_ref[...], axis=-1, keepdims=True) + b_ref[...]
    o_ref[...] = y.astype(o_ref.dtype)


def ln_readout(x, g, lb, w_row, b_out):
    # TODO(synk): lane-dense (B, T) output layout to avoid masked vst; skipped
    # since the whole output is only B*T floats.
    M, E = x.shape
    tm = _sublane_tile(M, ROW_TILE)
    return pl.pallas_call(
        _ln_readout_kernel,
        out_shape=jax.ShapeDtypeStruct((M, 1), x.dtype),
        grid=(M // tm,),
        in_specs=[
            pl.BlockSpec((tm, E), lambda i: (i, 0)),
            pl.BlockSpec((1, E), lambda i: (0, 0)),
            pl.BlockSpec((1, E), lambda i: (0, 0)),
            pl.BlockSpec((1, E), lambda i: (0, 0)),
            pl.BlockSpec((1, 1), lambda i: (0, 0)),
        ],
        out_specs=pl.BlockSpec((tm, 1), lambda i: (i, 0)),
        compiler_params=_cparams("parallel"),
    )(x, g, lb, w_row, b_out)


# ----------------------------------------------------------------------------
# Parameter init (deterministic, synthetic).  Matmul weights are stored bf16
# in HBM (they are only ever MXU operands); everything else stays f32.
# ----------------------------------------------------------------------------
def init_params(key, n_dims, n_positions, n_embd, n_layer, freq=2):
    block_size = freq * n_positions + 1
    keys = jax.random.split(key, 4 + n_layer)
    f32 = jnp.float32

    def nrm(k, shape, dtype=f32):
        return (0.02 * jax.random.normal(k, shape)).astype(dtype)

    p = {
        "read_in_w": nrm(keys[0], (n_dims, n_embd)),              # VPU path: f32
        "read_in_b": jnp.zeros((1, n_embd), f32),
        "wpe": nrm(keys[1], (block_size, n_embd)),
        "read_out_w": nrm(keys[2], (n_embd, 1)),                  # VPU path: f32
        "read_out_b": jnp.zeros((1, 1), f32),
        "ln_f_g": jnp.ones((1, n_embd), f32),
        "ln_f_b": jnp.zeros((1, n_embd), f32),
        "layers": [],
    }
    for i in range(n_layer):
        k = jax.random.split(keys[3 + i], 4)
        p["layers"].append({
            "ln1_g": jnp.ones((1, n_embd), f32),
            "ln1_b": jnp.zeros((1, n_embd), f32),
            "attn_w": nrm(k[0], (n_embd, 3 * n_embd), MXU_DTYPE),
            "attn_b": jnp.zeros((1, 3 * n_embd), f32),
            "proj_w": nrm(k[1], (n_embd, n_embd), MXU_DTYPE),
            "proj_b": jnp.zeros((1, n_embd), f32),
            "ln2_g": jnp.ones((1, n_embd), f32),
            "ln2_b": jnp.zeros((1, n_embd), f32),
            "fc_w": nrm(k[2], (n_embd, 4 * n_embd), MXU_DTYPE),
            "fc_b": jnp.zeros((1, 4 * n_embd), f32),
            "fc2_w": nrm(k[3], (4 * n_embd, n_embd), MXU_DTYPE),
            "fc2_b": jnp.zeros((1, n_embd), f32),
        })
    return p


# ----------------------------------------------------------------------------
# Forward pass (TransformerModel.forward, pred_type='regression')
# ----------------------------------------------------------------------------
def transformer_forward(params, xs, ys, n_head, freq=2, ind=0):
    B, n, d = xs.shape
    E = params["read_in_w"].shape[1]
    T = freq * n

    # _combine: interleave x_i and widened y_i rows -> [B, 2n, d]
    ys_wide = jnp.concatenate(
        [ys[..., None], jnp.zeros((B, n, d - 1), xs.dtype)], axis=-1)
    zs = jnp.stack([xs, ys_wide], axis=2).reshape(B, T, d)

    # read_in (VPU rank-1) fused with bias + learned positional-embedding add
    h = read_in(zs, params["read_in_w"], params["read_in_b"], params["wpe"][:T])
    h = h.reshape(B * T, E)                                # f32 residual stream

    for lp in params["layers"]:
        # attention sub-block: LN1+QKV fused (bf16 slab out), then attention
        # fused with the output projection + residual add (no att round trip)
        qkv = ln_linear(h, lp["ln1_g"], lp["ln1_b"], lp["attn_w"], lp["attn_b"],
                        out_dtype=MXU_DTYPE)
        h = attn_proj_residual(qkv.reshape(B, T, 3 * E), lp["proj_w"],
                               lp["proj_b"], h.reshape(B, T, E), n_head)
        h = h.reshape(B * T, E)
        # MLP sub-block: LN2 + fc1 + GELU + fc2 + residual, fully fused
        h = ln_mlp_residual(h, lp["ln2_g"], lp["ln2_b"],
                            lp["fc_w"], lp["fc_b"], lp["fc2_w"], lp["fc2_b"])

    # final LN fused with the read_out head, then y = prediction[:, ind::freq, 0]
    pred = ln_readout(h, params["ln_f_g"], params["ln_f_b"],
                      params["read_out_w"].T, params["read_out_b"])
    pred = pred.reshape(B, T)
    return pred[:, ind::freq]                              # [B, n]


# ----------------------------------------------------------------------------
# Main
# ----------------------------------------------------------------------------
if __name__ == "__main__":
    # Small shapes consistent with the module
    B, n, d_in = 2, 8, 4          # xs: [B, n, d_in], ys: [B, n]
    n_embd, n_layer, n_head = 32, 2, 4
    n_positions = n

    key = jax.random.PRNGKey(0)
    k_x, k_y, k_p = jax.random.split(key, 3)
    xs = jax.random.normal(k_x, (B, n, d_in), dtype=jnp.float32)
    ys = jax.random.normal(k_y, (B, n), dtype=jnp.float32)

    params = init_params(k_p, d_in, n_positions, n_embd, n_layer)

    fwd = jax.jit(functools.partial(transformer_forward, n_head=n_head))
    y = fwd(params, xs, ys)
    jax.block_until_ready(y)

    assert y.shape == (B, n), y.shape
    print("KERNEL_OK")
</pallas_src>

<mosaic_0001>
module attributes {stable_mosaic.version = 11 : i64} {
  func.func @_read_in_kernel(%arg0: i32, %arg1: memref<1x16x4xf32, #tpu.memory_space<vmem>>, %arg2: memref<4x32xf32, #tpu.memory_space<vmem>>, %arg3: memref<1x32xf32, #tpu.memory_space<vmem>>, %arg4: memref<16x32xf32, #tpu.memory_space<vmem>>, %arg5: memref<1x16x32xf32, #tpu.memory_space<vmem>>) attributes {dimension_semantics = [#tpu.dimension_semantics<parallel>], iteration_bounds = array<i64: 2>, scalar_prefetch = 0 : i64, scratch_operands = 0 : i64, tpu.core_type = #tpu.core_type<tc>, window_params = [{transform_indices = @transform_0, window_bounds = array<i64: 1, 16, 4>}, {pipeline_mode = #tpu.pipeline_mode<synchronous>, transform_indices = @transform_1, window_bounds = array<i64: 4, 32>}, {pipeline_mode = #tpu.pipeline_mode<synchronous>, transform_indices = @transform_2, window_bounds = array<i64: 1, 32>}, {pipeline_mode = #tpu.pipeline_mode<synchronous>, transform_indices = @transform_3, window_bounds = array<i64: 16, 32>}, {transform_indices = @transform_4, window_bounds = array<i64: 1, 16, 32>}]} {
    %c0 = arith.constant 0 : index
    %c0_0 = arith.constant 0 : index
    %c0_1 = arith.constant 0 : index
    %0 = vector.load %arg1[%c0, %c0_0, %c0_1] : memref<1x16x4xf32, #tpu.memory_space<vmem>>, vector<1x16x4xf32>
    %1 = vector.shape_cast %0 : vector<1x16x4xf32> to vector<16x4xf32>
    %c0_2 = arith.constant 0 : index
    %c0_3 = arith.constant 0 : index
    %2 = vector.load %arg2[%c0_2, %c0_3] : memref<4x32xf32, #tpu.memory_space<vmem>>, vector<4x32xf32>
    %c0_4 = arith.constant 0 : index
    %c0_5 = arith.constant 0 : index
    %3 = vector.load %arg3[%c0_4, %c0_5] : memref<1x32xf32, #tpu.memory_space<vmem>>, vector<1x32xf32>
    %c0_6 = arith.constant 0 : index
    %c0_7 = arith.constant 0 : index
    %4 = vector.load %arg4[%c0_6, %c0_7] : memref<16x32xf32, #tpu.memory_space<vmem>>, vector<16x32xf32>
    %5 = vector.broadcast %3 : vector<1x32xf32> to vector<16x32xf32>
    %6 = arith.addf %5, %4 : vector<16x32xf32>
    %7 = vector.extract_strided_slice %1 {offsets = [0, 0], sizes = [16, 1], strides = [1, 1]} : vector<16x4xf32> to vector<16x1xf32>
    %8 = vector.extract_strided_slice %2 {offsets = [0, 0], sizes = [1, 32], strides = [1, 1]} : vector<4x32xf32> to vector<1x32xf32>
    %9 = vector.broadcast %7 : vector<16x1xf32> to vector<16x32xf32>
    %10 = vector.broadcast %8 : vector<1x32xf32> to vector<16x32xf32>
    %11 = arith.mulf %9, %10 : vector<16x32xf32>
    %12 = arith.addf %6, %11 : vector<16x32xf32>
    %13 = vector.extract_strided_slice %1 {offsets = [0, 1], sizes = [16, 1], strides = [1, 1]} : vector<16x4xf32> to vector<16x1xf32>
    %14 = vector.extract_strided_slice %2 {offsets = [1, 0], sizes = [1, 32], strides = [1, 1]} : vector<4x32xf32> to vector<1x32xf32>
    %15 = vector.broadcast %13 : vector<16x1xf32> to vector<16x32xf32>
    %16 = vector.broadcast %14 : vector<1x32xf32> to vector<16x32xf32>
    %17 = arith.mulf %15, %16 : vector<16x32xf32>
    %18 = arith.addf %12, %17 : vector<16x32xf32>
    %19 = vector.extract_strided_slice %1 {offsets = [0, 2], sizes = [16, 1], strides = [1, 1]} : vector<16x4xf32> to vector<16x1xf32>
    %20 = vector.extract_strided_slice %2 {offsets = [2, 0], sizes = [1, 32], strides = [1, 1]} : vector<4x32xf32> to vector<1x32xf32>
    %21 = vector.broadcast %19 : vector<16x1xf32> to vector<16x32xf32>
    %22 = vector.broadcast %20 : vector<1x32xf32> to vector<16x32xf32>
    %23 = arith.mulf %21, %22 : vector<16x32xf32>
    %24 = arith.addf %18, %23 : vector<16x32xf32>
    %25 = vector.extract_strided_slice %1 {offsets = [0, 3], sizes = [16, 1], strides = [1, 1]} : vector<16x4xf32> to vector<16x1xf32>
    %26 = vector.extract_strided_slice %2 {offsets = [3, 0], sizes = [1, 32], strides = [1, 1]} : vector<4x32xf32> to vector<1x32xf32>
    %27 = vector.broadcast %25 : vector<16x1xf32> to vector<16x32xf32>
    %28 = vector.broadcast %26 : vector<1x32xf32> to vector<16x32xf32>
    %29 = arith.mulf %27, %28 : vector<16x32xf32>
    %30 = arith.addf %24, %29 : vector<16x32xf32>
    %c0_8 = arith.constant 0 : index
    %c0_9 = arith.constant 0 : index
    %c0_10 = arith.constant 0 : index
    %31 = vector.load %arg5[%c0_8, %c0_9, %c0_10] : memref<1x16x32xf32, #tpu.memory_space<vmem>>, vector<1x16x32xf32>
    %32 = vector.shape_cast %31 : vector<1x16x32xf32> to vector<16x32xf32>
    %33 = vector.shape_cast %30 : vector<16x32xf32> to vector<1x16x32xf32>
    tpu.vector_store %arg5[%c0_8, %c0_9, %c0_10], %33 {strides = array<i32>} : memref<1x16x32xf32, #tpu.memory_space<vmem>>, vector<1x16x32xf32>,
    return
  }
  func.func @transform_0(%arg0: i32) -> (i32, i32, i32) {
    %c0_i32 = arith.constant 0 : i32
    %c0_i32_0 = arith.constant 0 : i32
    %c0_i32_1 = arith.constant 0 : i32
    return %arg0, %c0_i32, %c0_i32_0 : i32, i32, i32
  }
  func.func @transform_1(%arg0: i32) -> (i32, i32) {
    %c0_i32 = arith.constant 0 : i32
    %c0_i32_0 = arith.constant 0 : i32
    %c0_i32_1 = arith.constant 0 : i32
    return %c0_i32, %c0_i32_0 : i32, i32
  }
  func.func @transform_2(%arg0: i32) -> (i32, i32) {
    %c0_i32 = arith.constant 0 : i32
    %c0_i32_0 = arith.constant 0 : i32
    %c0_i32_1 = arith.constant 0 : i32
    return %c0_i32, %c0_i32_0 : i32, i32
  }
  func.func @transform_3(%arg0: i32) -> (i32, i32) {
    %c0_i32 = arith.constant 0 : i32
    %c0_i32_0 = arith.constant 0 : i32
    %c0_i32_1 = arith.constant 0 : i32
    return %c0_i32, %c0_i32_0 : i32, i32
  }
  func.func @transform_4(%arg0: i32) -> (i32, i32, i32) {
    %c0_i32 = arith.constant 0 : i32
    %c0_i32_0 = arith.constant 0 : i32
    %c0_i32_1 = arith.constant 0 : i32
    return %arg0, %c0_i32, %c0_i32_0 : i32, i32, i32
  }
}

module attributes {stable_mosaic.version = 11 : i64} {
  func.func @_ln_linear_kernel(%arg0: i32, %arg1: i32, %arg2: memref<32x32xf32, #tpu.memory_space<vmem>>, %arg3: memref<1x32xf32, #tpu.memory_space<vmem>>, %arg4: memref<1x32xf32, #tpu.memory_space<vmem>>, %arg5: memref<32x96xbf16, #tpu.memory_space<vmem>>, %arg6: memref<1x96xf32, #tpu.memory_space<vmem>>, %arg7: memref<32x96xbf16, #tpu.memory_space<vmem>>, %arg8: memref<32x32xf32, #tpu.memory_space<vmem>>) attributes {dimension_semantics = [#tpu.dimension_semantics<parallel>, #tpu.dimension_semantics<arbitrary>], iteration_bounds = array<i64: 1, 1>, scalar_prefetch = 0 : i64, scratch_operands = 1 : i64, tpu.core_type = #tpu.core_type<tc>, window_params = [{transform_indices = @transform_0, window_bounds = array<i64: 32, 32>}, {pipeline_mode = #tpu.pipeline_mode<synchronous>, transform_indices = @transform_1, window_bounds = array<i64: 1, 32>}, {pipeline_mode = #tpu.pipeline_mode<synchronous>, transform_indices = @transform_2, window_bounds = array<i64: 1, 32>}, {transform_indices = @transform_3, window_bounds = array<i64: 32, 96>}, {transform_indices = @transform_4, window_bounds = array<i64: 1, 96>}, {transform_indices = @transform_5, window_bounds = array<i64: 32, 96>}]} {
    %c0_i32 = arith.constant 0 : i32
    %0 = arith.cmpi eq, %arg1, %c0_i32 : i32
    %1 = arith.extui %0 : i1 to i32
    %c0_i32_0 = arith.constant 0 : i32
    %2 = arith.cmpi ne, %1, %c0_i32_0 : i32
    scf.if %2 {
      %c0_8 = arith.constant 0 : index
      %c0_9 = arith.constant 0 : index
      %12 = vector.load %arg2[%c0_8, %c0_9] : memref<32x32xf32, #tpu.memory_space<vmem>>, vector<32x32xf32>
      %c0_10 = arith.constant 0 : index
      %c0_11 = arith.constant 0 : index
      %13 = vector.load %arg3[%c0_10, %c0_11] : memref<1x32xf32, #tpu.memory_space<vmem>>, vector<1x32xf32>
      %c0_12 = arith.constant 0 : index
      %c0_13 = arith.constant 0 : index
      %14 = vector.load %arg4[%c0_12, %c0_13] : memref<1x32xf32, #tpu.memory_space<vmem>>, vector<1x32xf32>
      %cst_14 = arith.constant dense<0.000000e+00> : vector<32xf32>
      %15 = vector.multi_reduction <add>, %12, %cst_14 [1] : vector<32x32xf32> to vector<32xf32>
      %16 = vector.shape_cast %15 : vector<32xf32> to vector<32x1xf32>
      %cst_15 = arith.constant 3.200000e+01 : f32
      %17 = vector.broadcast %cst_15 : f32 to vector<32x1xf32>
      %18 = arith.divf %16, %17 : vector<32x1xf32>
      %19 = vector.broadcast %18 : vector<32x1xf32> to vector<32x32xf32>
      %20 = arith.subf %12, %19 : vector<32x32xf32>
      %21 = arith.mulf %20, %20 : vector<32x32xf32>
      %cst_16 = arith.constant dense<0.000000e+00> : vector<32xf32>
      %22 = vector.multi_reduction <add>, %21, %cst_16 [1] : vector<32x32xf32> to vector<32xf32>
      %23 = vector.shape_cast %22 : vector<32xf32> to vector<32x1xf32>
      %cst_17 = arith.constant 3.200000e+01 : f32
      %24 = vector.broadcast %cst_17 : f32 to vector<32x1xf32>
      %25 = arith.divf %23, %24 : vector<32x1xf32>
      %26 = vector.broadcast %18 : vector<32x1xf32> to vector<32x32xf32>
      %27 = arith.subf %12, %26 : vector<32x32xf32>
      %cst_18 = arith.constant 9.99999974E-6 : f32
      %28 = vector.broadcast %cst_18 : f32 to vector<32x1xf32>
      %29 = arith.addf %25, %28 : vector<32x1xf32>
      %30 = math.rsqrt %29 : vector<32x1xf32>
      %31 = vector.broadcast %30 : vector<32x1xf32> to vector<32x32xf32>
      %32 = arith.mulf %27, %31 : vector<32x32xf32>
      %33 = vector.broadcast %13 : vector<1x32xf32> to vector<32x32xf32>
      %34 = arith.mulf %32, %33 : vector<32x32xf32>
      %35 = vector.broadcast %14 : vector<1x32xf32> to vector<32x32xf32>
      %36 = arith.addf %34, %35 : vector<32x32xf32>
      %c0_19 = arith.constant 0 : index
      %c0_20 = arith.constant 0 : index
      %37 = vector.load %arg8[%c0_19, %c0_20] : memref<32x32xf32, #tpu.memory_space<vmem>>, vector<32x32xf32>
      tpu.vector_store %arg8[%c0_19, %c0_20], %36 {strides = array<i32>} : memref<32x32xf32, #tpu.memory_space<vmem>>, vector<32x32xf32>,
    } else {
    }
    %c0 = arith.constant 0 : index
    %c0_1 = arith.constant 0 : index
    %3 = vector.load %arg8[%c0, %c0_1] : memref<32x32xf32, #tpu.memory_space<vmem>>, vector<32x32xf32>
    %4 = arith.truncf %3 : vector<32x32xf32> to vector<32x32xbf16>
    %c0_2 = arith.constant 0 : index
    %c0_3 = arith.constant 0 : index
    %5 = vector.load %arg5[%c0_2, %c0_3] : memref<32x96xbf16, #tpu.memory_space<vmem>>, vector<32x96xbf16>
    %cst = arith.constant dense<0.000000e+00> : vector<32x96xf32>
    %6 = tpu.matmul %4, %5, %cst {dimension_numbers = #tpu.dot_dimension_numbers<[1], [0], [0], [1], [0, 0, 1, 1], [], []>} : vector<32x32xbf16>, vector<32x96xbf16>, vector<32x96xf32> -> vector<32x96xf32>
    %c0_4 = arith.constant 0 : index
    %c0_5 = arith.constant 0 : index
    %7 = vector.load %arg6[%c0_4, %c0_5] : memref<1x96xf32, #tpu.memory_space<vmem>>, vector<1x96xf32>
    %8 = vector.broadcast %7 : vector<1x96xf32> to vector<32x96xf32>
    %9 = arith.addf %6, %8 : vector<32x96xf32>
    %10 = arith.truncf %9 : vector<32x96xf32> to vector<32x96xbf16>
    %c0_6 = arith.constant 0 : index
    %c0_7 = arith.constant 0 : index
    %11 = vector.load %arg7[%c0_6, %c0_7] : memref<32x96xbf16, #tpu.memory_space<vmem>>, vector<32x96xbf16>
    tpu.vector_store %arg7[%c0_6, %c0_7], %10 {strides = array<i32>} : memref<32x96xbf16, #tpu.memory_space<vmem>>, vector<32x96xbf16>,
    return
  }
  func.func @transform_0(%arg0: i32, %arg1: i32) -> (i32, i32) {
    %c0_i32 = arith.constant 0 : i32
    %c0_i32_0 = arith.constant 0 : i32
    return %arg0, %c0_i32 : i32, i32
  }
  func.func @transform_1(%arg0: i32, %arg1: i32) -> (i32, i32) {
    %c0_i32 = arith.constant 0 : i32
    %c0_i32_0 = arith.constant 0 : i32
    %c0_i32_1 = arith.constant 0 : i32
    return %c0_i32, %c0_i32_0 : i32, i32
  }
  func.func @transform_2(%arg0: i32, %arg1: i32) -> (i32, i32) {
    %c0_i32 = arith.constant 0 : i32
    %c0_i32_0 = arith.constant 0 : i32
    %c0_i32_1 = arith.constant 0 : i32
    return %c0_i32, %c0_i32_0 : i32, i32
  }
  func.func @transform_3(%arg0: i32, %arg1: i32) -> (i32, i32) {
    %c0_i32 = arith.constant 0 : i32
    %c0_i32_0 = arith.constant 0 : i32
    return %c0_i32, %arg1 : i32, i32
  }
  func.func @transform_4(%arg0: i32, %arg1: i32) -> (i32, i32) {
    %c0_i32 = arith.constant 0 : i32
    %c0_i32_0 = arith.constant 0 : i32
    return %c0_i32, %arg1 : i32, i32
  }
  func.func @transform_5(%arg0: i32, %arg1: i32) -> (i32, i32) {
    %c0_i32 = arith.constant 0 : i32
    return %arg0, %arg1 : i32, i32
  }
}

module attributes {stable_mosaic.version = 11 : i64} {
  func.func @_attn_proj_res_kernel(%arg0: i32, %arg1: i32, %arg2: memref<1x16x96xbf16, #tpu.memory_space<vmem>>, %arg3: memref<1x16x96xbf16, #tpu.memory_space<vmem>>, %arg4: memref<32x32xbf16, #tpu.memory_space<vmem>>, %arg5: memref<1x32xf32, #tpu.memory_space<vmem>>, %arg6: memref<1x16x32xf32, #tpu.memory_space<vmem>>, %arg7: memref<1x16x32xf32, #tpu.memory_space<vmem>>, %arg8: memref<16x32xf32, #tpu.memory_space<vmem>>) attributes {dimension_semantics = [#tpu.dimension_semantics<parallel>, #tpu.dimension_semantics<parallel>], iteration_bounds = array<i64: 2, 1>, scalar_prefetch = 0 : i64, scratch_operands = 1 : i64, tpu.core_type = #tpu.core_type<tc>, window_params = [{transform_indices = @transform_0, window_bounds = array<i64: 1, 16, 96>}, {transform_indices = @transform_1, window_bounds = array<i64: 1, 16, 96>}, {pipeline_mode = #tpu.pipeline_mode<synchronous>, transform_indices = @transform_2, window_bounds = array<i64: 32, 32>}, {pipeline_mode = #tpu.pipeline_mode<synchronous>, transform_indices = @transform_3, window_bounds = array<i64: 1, 32>}, {transform_indices = @transform_4, window_bounds = array<i64: 1, 16, 32>}, {transform_indices = @transform_5, window_bounds = array<i64: 1, 16, 32>}]} {
    %c0 = arith.constant 0 : index
    %c0_0 = arith.constant 0 : index
    %c0_1 = arith.constant 0 : index
    %0 = vector.load %arg2[%c0, %c0_0, %c0_1] : memref<1x16x96xbf16, #tpu.memory_space<vmem>>, vector<1x16x96xbf16>
    %1 = vector.shape_cast %0 : vector<1x16x96xbf16> to vector<16x96xbf16>
    %c0_2 = arith.constant 0 : index
    %c0_3 = arith.constant 0 : index
    %c0_4 = arith.constant 0 : index
    %2 = vector.load %arg3[%c0_2, %c0_3, %c0_4] : memref<1x16x96xbf16, #tpu.memory_space<vmem>>, vector<1x16x96xbf16>
    %3 = vector.shape_cast %2 : vector<1x16x96xbf16> to vector<16x96xbf16>
    %4 = tpu.iota {dimensions = array<i32: 0>} : vector<16x16xi32>
    %c16_i32 = arith.constant 16 : i32
    %5 = arith.muli %arg1, %c16_i32 : i32
    %6 = vector.broadcast %5 : i32 to vector<16x16xi32>
    %7 = arith.addi %4, %6 : vector<16x16xi32>
    %8 = tpu.iota {dimensions = array<i32: 1>} : vector<16x16xi32>
    %9 = arith.cmpi sle, %8, %7 : vector<16x16xi32>
    %10 = vector.extract_strided_slice %1 {offsets = [0, 0], sizes = [16, 8], strides = [1, 1]} : vector<16x96xbf16> to vector<16x8xbf16>
    %11 = vector.extract_strided_slice %3 {offsets = [0, 32], sizes = [16, 8], strides = [1, 1]} : vector<16x96xbf16> to vector<16x8xbf16>
    %12 = vector.extract_strided_slice %3 {offsets = [0, 64], sizes = [16, 8], strides = [1, 1]} : vector<16x96xbf16> to vector<16x8xbf16>
    %cst = arith.constant dense<0.000000e+00> : vector<16x16xf32>
    %13 = tpu.matmul %10, %11, %cst {dimension_numbers = #tpu.dot_dimension_numbers<[1], [1], [0], [0], [0, 0, 1, 0], [], []>} : vector<16x8xbf16>, vector<16x8xbf16>, vector<16x16xf32> -> vector<16x16xf32>
    %cst_5 = arith.constant 0.353553385 : f32
    %14 = vector.broadcast %cst_5 : f32 to vector<16x16xf32>
    %15 = arith.mulf %13, %14 : vector<16x16xf32>
    %cst_6 = arith.constant -1.000000e+30 : f32
    %16 = vector.broadcast %cst_6 : f32 to vector<16x16xf32>
    %17 = arith.select %9, %15, %16 : vector<16x16xi1>, vector<16x16xf32>
    %cst_7 = arith.constant dense<0xFF800000> : vector<16xf32>
    %18 = vector.multi_reduction <maximumf>, %17, %cst_7 [1] : vector<16x16xf32> to vector<16xf32>
    %19 = vector.shape_cast %18 : vector<16xf32> to vector<16x1xf32>
    %20 = vector.broadcast %19 : vector<16x1xf32> to vector<16x16xf32>
    %21 = arith.subf %17, %20 : vector<16x16xf32>
    %22 = math.exp %21 : vector<16x16xf32>
    %cst_8 = arith.constant dense<0.000000e+00> : vector<16xf32>
    %23 = vector.multi_reduction <add>, %22, %cst_8 [1] : vector<16x16xf32> to vector<16xf32>
    %24 = vector.shape_cast %23 : vector<16xf32> to vector<16x1xf32>
    %25 = tpu.reciprocal %24 {approx = true} : vector<16x1xf32> -> vector<16x1xf32>
    %26 = arith.truncf %22 : vector<16x16xf32> to vector<16x16xbf16>
    %cst_9 = arith.constant dense<0.000000e+00> : vector<16x8xf32>
    %27 = tpu.matmul %26, %12, %cst_9 {dimension_numbers = #tpu.dot_dimension_numbers<[1], [0], [0], [1], [0, 0, 1, 1], [], []>} : vector<16x16xbf16>, vector<16x8xbf16>, vector<16x8xf32> -> vector<16x8xf32>
    %28 = vector.broadcast %25 : vector<16x1xf32> to vector<16x8xf32>
    %29 = arith.mulf %27, %28 : vector<16x8xf32>
    %c0_10 = arith.constant 0 : index
    %c0_11 = arith.constant 0 : index
    %30 = vector.load %arg8[%c0_10, %c0_11] : memref<16x32xf32, #tpu.memory_space<vmem>>, vector<16x8xf32>
    tpu.vector_store %arg8[%c0_10, %c0_11], %29 {strides = array<i32>} : memref<16x32xf32, #tpu.memory_space<vmem>>, vector<16x8xf32>,
    %31 = vector.extract_strided_slice %1 {offsets = [0, 8], sizes = [16, 8], strides = [1, 1]} : vector<16x96xbf16> to vector<16x8xbf16>
    %32 = vector.extract_strided_slice %3 {offsets = [0, 40], sizes = [16, 8], strides = [1, 1]} : vector<16x96xbf16> to vector<16x8xbf16>
    %33 = vector.extract_strided_slice %3 {offsets = [0, 72], sizes = [16, 8], strides = [1, 1]} : vector<16x96xbf16> to vector<16x8xbf16>
    %cst_12 = arith.constant dense<0.000000e+00> : vector<16x16xf32>
    %34 = tpu.matmul %31, %32, %cst_12 {dimension_numbers = #tpu.dot_dimension_numbers<[1], [1], [0], [0], [0, 0, 1, 0], [], []>} : vector<16x8xbf16>, vector<16x8xbf16>, vector<16x16xf32> -> vector<16x16xf32>
    %cst_13 = arith.constant 0.353553385 : f32
    %35 = vector.broadcast %cst_13 : f32 to vector<16x16xf32>
    %36 = arith.mulf %34, %35 : vector<16x16xf32>
    %cst_14 = arith.constant -1.000000e+30 : f32
    %37 = vector.broadcast %cst_14 : f32 to vector<16x16xf32>
    %38 = arith.select %9, %36, %37 : vector<16x16xi1>, vector<16x16xf32>
    %cst_15 = arith.constant dense<0xFF800000> : vector<16xf32>
    %39 = vector.multi_reduction <maximumf>, %38, %cst_15 [1] : vector<16x16xf32> to vector<16xf32>
    %40 = vector.shape_cast %39 : vector<16xf32> to vector<16x1xf32>
    %41 = vector.broadcast %40 : vector<16x1xf32> to vector<16x16xf32>
    %42 = arith.subf %38, %41 : vector<16x16xf32>
    %43 = math.exp %42 : vector<16x16xf32>
    %cst_16 = arith.constant dense<0.000000e+00> : vector<16xf32>
    %44 = vector.multi_reduction <add>, %43, %cst_16 [1] : vector<16x16xf32> to vector<16xf32>
    %45 = vector.shape_cast %44 : vector<16xf32> to vector<16x1xf32>
    %46 = tpu.reciprocal %45 {approx = true} : vector<16x1xf32> -> vector<16x1xf32>
    %47 = arith.truncf %43 : vector<16x16xf32> to vector<16x16xbf16>
    %cst_17 = arith.constant dense<0.000000e+00> : vector<16x8xf32>
    %48 = tpu.matmul %47, %33, %cst_17 {dimension_numbers = #tpu.dot_dimension_numbers<[1], [0], [0], [1], [0, 0, 1, 1], [], []>} : vector<16x16xbf16>, vector<16x8xbf16>, vector<16x8xf32> -> vector<16x8xf32>
    %49 = vector.broadcast %46 : vector<16x1xf32> to vector<16x8xf32>
    %50 = arith.mulf %48, %49 : vector<16x8xf32>
    %c0_18 = arith.constant 0 : index
    %c8 = arith.constant 8 : index
    %51 = vector.load %arg8[%c0_18, %c8] : memref<16x32xf32, #tpu.memory_space<vmem>>, vector<16x8xf32>
    tpu.vector_store %arg8[%c0_18, %c8], %50 {strides = array<i32>} : memref<16x32xf32, #tpu.memory_space<vmem>>, vector<16x8xf32>,
    %52 = vector.extract_strided_slice %1 {offsets = [0, 16], sizes = [16, 8], strides = [1, 1]} : vector<16x96xbf16> to vector<16x8xbf16>
    %53 = vector.extract_strided_slice %3 {offsets = [0, 48], sizes = [16, 8], strides = [1, 1]} : vector<16x96xbf16> to vector<16x8xbf16>
    %54 = vector.extract_strided_slice %3 {offsets = [0, 80], sizes = [16, 8], strides = [1, 1]} : vector<16x96xbf16> to vector<16x8xbf16>
    %cst_19 = arith.constant dense<0.000000e+00> : vector<16x16xf32>
    %55 = tpu.matmul %52, %53, %cst_19 {dimension_numbers = #tpu.dot_dimension_numbers<[1], [1], [0], [0], [0, 0, 1, 0], [], []>} : vector<16x8xbf16>, vector<16x8xbf16>, vector<16x16xf32> -> vector<16x16xf32>
    %cst_20 = arith.constant 0.353553385 : f32
    %56 = vector.broadcast %cst_20 : f32 to vector<16x16xf32>
    %57 = arith.mulf %55, %56 : vector<16x16xf32>
    %cst_21 = arith.constant -1.000000e+30 : f32
    %58 = vector.broadcast %cst_21 : f32 to vector<16x16xf32>
    %59 = arith.select %9, %57, %58 : vector<16x16xi1>, vector<16x16xf32>
    %cst_22 = arith.constant dense<0xFF800000> : vector<16xf32>
    %60 = vector.multi_reduction <maximumf>, %59, %cst_22 [1] : vector<16x16xf32> to vector<16xf32>
    %61 = vector.shape_cast %60 : vector<16xf32> to vector<16x1xf32>
    %62 = vector.broadcast %61 : vector<16x1xf32> to vector<16x16xf32>
    %63 = arith.subf %59, %62 : vector<16x16xf32>
    %64 = math.exp %63 : vector<16x16xf32>
    %cst_23 = arith.constant dense<0.000000e+00> : vector<16xf32>
    %65 = vector.multi_reduction <add>, %64, %cst_23 [1] : vector<16x16xf32> to vector<16xf32>
    %66 = vector.shape_cast %65 : vector<16xf32> to vector<16x1xf32>
    %67 = tpu.reciprocal %66 {approx = true} : vector<16x1xf32> -> vector<16x1xf32>
    %68 = arith.truncf %64 : vector<16x16xf32> to vector<16x16xbf16>
    %cst_24 = arith.constant dense<0.000000e+00> : vector<16x8xf32>
    %69 = tpu.matmul %68, %54, %cst_24 {dimension_numbers = #tpu.dot_dimension_numbers<[1], [0], [0], [1], [0, 0, 1, 1], [], []>} : vector<16x16xbf16>, vector<16x8xbf16>, vector<16x8xf32> -> vector<16x8xf32>
    %70 = vector.broadcast %67 : vector<16x1xf32> to vector<16x8xf32>
    %71 = arith.mulf %69, %70 : vector<16x8xf32>
    %c0_25 = arith.constant 0 : index
    %c16 = arith.constant 16 : index
    %72 = vector.load %arg8[%c0_25, %c16] : memref<16x32xf32, #tpu.memory_space<vmem>>, vector<16x8xf32>
    tpu.vector_store %arg8[%c0_25, %c16], %71 {strides = array<i32>} : memref<16x32xf32, #tpu.memory_space<vmem>>, vector<16x8xf32>,
    %73 = vector.extract_strided_slice %1 {offsets = [0, 24], sizes = [16, 8], strides = [1, 1]} : vector<16x96xbf16> to vector<16x8xbf16>
    %74 = vector.extract_strided_slice %3 {offsets = [0, 56], sizes = [16, 8], strides = [1, 1]} : vector<16x96xbf16> to vector<16x8xbf16>
    %75 = vector.extract_strided_slice %3 {offsets = [0, 88], sizes = [16, 8], strides = [1, 1]} : vector<16x96xbf16> to vector<16x8xbf16>
    %cst_26 = arith.constant dense<0.000000e+00> : vector<16x16xf32>
    %76 = tpu.matmul %73, %74, %cst_26 {dimension_numbers = #tpu.dot_dimension_numbers<[1], [1], [0], [0], [0, 0, 1, 0], [], []>} : vector<16x8xbf16>, vector<16x8xbf16>, vector<16x16xf32> -> vector<16x16xf32>
    %cst_27 = arith.constant 0.353553385 : f32
    %77 = vector.broadcast %cst_27 : f32 to vector<16x16xf32>
    %78 = arith.mulf %76, %77 : vector<16x16xf32>
    %cst_28 = arith.constant -1.000000e+30 : f32
    %79 = vector.broadcast %cst_28 : f32 to vector<16x16xf32>
    %80 = arith.select %9, %78, %79 : vector<16x16xi1>, vector<16x16xf32>
    %cst_29 = arith.constant dense<0xFF800000> : vector<16xf32>
    %81 = vector.multi_reduction <maximumf>, %80, %cst_29 [1] : vector<16x16xf32> to vector<16xf32>
    %82 = vector.shape_cast %81 : vector<16xf32> to vector<16x1xf32>
    %83 = vector.broadcast %82 : vector<16x1xf32> to vector<16x16xf32>
    %84 = arith.subf %80, %83 : vector<16x16xf32>
    %85 = math.exp %84 : vector<16x16xf32>
    %cst_30 = arith.constant dense<0.000000e+00> : vector<16xf32>
    %86 = vector.multi_reduction <add>, %85, %cst_30 [1] : vector<16x16xf32> to vector<16xf32>
    %87 = vector.shape_cast %86 : vector<16xf32> to vector<16x1xf32>
    %88 = tpu.reciprocal %87 {approx = true} : vector<16x1xf32> -> vector<16x1xf32>
    %89 = arith.truncf %85 : vector<16x16xf32> to vector<16x16xbf16>
    %cst_31 = arith.constant dense<0.000000e+00> : vector<16x8xf32>
    %90 = tpu.matmul %89, %75, %cst_31 {dimension_numbers = #tpu.dot_dimension_numbers<[1], [0], [0], [1], [0, 0, 1, 1], [], []>} : vector<16x16xbf16>, vector<16x8xbf16>, vector<16x8xf32> -> vector<16x8xf32>
    %91 = vector.broadcast %88 : vector<16x1xf32> to vector<16x8xf32>
    %92 = arith.mulf %90, %91 : vector<16x8xf32>
    %c0_32 = arith.constant 0 : index
    %c24 = arith.constant 24 : index
    %93 = vector.load %arg8[%c0_32, %c24] : memref<16x32xf32, #tpu.memory_space<vmem>>, vector<16x8xf32>
    tpu.vector_store %arg8[%c0_32, %c24], %92 {strides = array<i32>} : memref<16x32xf32, #tpu.memory_space<vmem>>, vector<16x8xf32>,
    %c0_33 = arith.constant 0 : index
    %c0_34 = arith.constant 0 : index
    %94 = vector.load %arg8[%c0_33, %c0_34] : memref<16x32xf32, #tpu.memory_space<vmem>>, vector<16x32xf32>
    %95 = arith.truncf %94 : vector<16x32xf32> to vector<16x32xbf16>
    %c0_35 = arith.constant 0 : index
    %c0_36 = arith.constant 0 : index
    %96 = vector.load %arg4[%c0_35, %c0_36] : memref<32x32xbf16, #tpu.memory_space<vmem>>, vector<32x32xbf16>
    %cst_37 = arith.constant dense<0.000000e+00> : vector<16x32xf32>
    %97 = tpu.matmul %95, %96, %cst_37 {dimension_numbers = #tpu.dot_dimension_numbers<[1], [0], [0], [1], [0, 0, 1, 1], [], []>} : vector<16x32xbf16>, vector<32x32xbf16>, vector<16x32xf32> -> vector<16x32xf32>
    %c0_38 = arith.constant 0 : index
    %c0_39 = arith.constant 0 : index
    %98 = vector.load %arg5[%c0_38, %c0_39] : memref<1x32xf32, #tpu.memory_space<vmem>>, vector<1x32xf32>
    %99 = vector.broadcast %98 : vector<1x32xf32> to vector<16x32xf32>
    %100 = arith.addf %97, %99 : vector<16x32xf32>
    %c0_40 = arith.constant 0 : index
    %c0_41 = arith.constant 0 : index
    %c0_42 = arith.constant 0 : index
    %101 = vector.load %arg6[%c0_40, %c0_41, %c0_42] : memref<1x16x32xf32, #tpu.memory_space<vmem>>, vector<1x16x32xf32>
    %102 = vector.shape_cast %101 : vector<1x16x32xf32> to vector<16x32xf32>
    %103 = arith.addf %100, %102 : vector<16x32xf32>
    %c0_43 = arith.constant 0 : index
    %c0_44 = arith.constant 0 : index
    %c0_45 = arith.constant 0 : index
    %104 = vector.load %arg7[%c0_43, %c0_44, %c0_45] : memref<1x16x32xf32, #tpu.memory_space<vmem>>, vector<1x16x32xf32>
    %105 = vector.shape_cast %104 : vector<1x16x32xf32> to vector<16x32xf32>
    %106 = vector.shape_cast %103 : vector<16x32xf32> to vector<1x16x32xf32>
    tpu.vector_store %arg7[%c0_43, %c0_44, %c0_45], %106 {strides = array<i32>} : memref<1x16x32xf32, #tpu.memory_space<vmem>>, vector<1x16x32xf32>,
    return
  }
  func.func @transform_0(%arg0: i32, %arg1: i32) -> (i32, i32, i32) {
    %c0_i32 = arith.constant 0 : i32
    %c0_i32_0 = arith.constant 0 : i32
    return %arg0, %arg1, %c0_i32 : i32, i32, i32
  }
  func.func @transform_1(%arg0: i32, %arg1: i32) -> (i32, i32, i32) {
    %c0_i32 = arith.constant 0 : i32
    %c0_i32_0 = arith.constant 0 : i32
    %c0_i32_1 = arith.constant 0 : i32
    return %arg0, %c0_i32, %c0_i32_0 : i32, i32, i32
  }
  func.func @transform_2(%arg0: i32, %arg1: i32) -> (i32, i32) {
    %c0_i32 = arith.constant 0 : i32
    %c0_i32_0 = arith.constant 0 : i32
    %c0_i32_1 = arith.constant 0 : i32
    return %c0_i32, %c0_i32_0 : i32, i32
  }
  func.func @transform_3(%arg0: i32, %arg1: i32) -> (i32, i32) {
    %c0_i32 = arith.constant 0 : i32
    %c0_i32_0 = arith.constant 0 : i32
    %c0_i32_1 = arith.constant 0 : i32
    return %c0_i32, %c0_i32_0 : i32, i32
  }
  func.func @transform_4(%arg0: i32, %arg1: i32) -> (i32, i32, i32) {
    %c0_i32 = arith.constant 0 : i32
    %c0_i32_0 = arith.constant 0 : i32
    return %arg0, %arg1, %c0_i32 : i32, i32, i32
  }
  func.func @transform_5(%arg0: i32, %arg1: i32) -> (i32, i32, i32) {
    %c0_i32 = arith.constant 0 : i32
    %c0_i32_0 = arith.constant 0 : i32
    return %arg0, %arg1, %c0_i32 : i32, i32, i32
  }
}

module attributes {stable_mosaic.version = 11 : i64} {
  func.func @_ln_mlp_res_kernel(%arg0: i32, %arg1: i32, %arg2: memref<32x32xf32, #tpu.memory_space<vmem>>, %arg3: memref<1x32xf32, #tpu.memory_space<vmem>>, %arg4: memref<1x32xf32, #tpu.memory_space<vmem>>, %arg5: memref<32x128xbf16, #tpu.memory_space<vmem>>, %arg6: memref<1x128xf32, #tpu.memory_space<vmem>>, %arg7: memref<128x32xbf16, #tpu.memory_space<vmem>>, %arg8: memref<1x32xf32, #tpu.memory_space<vmem>>, %arg9: memref<32x32xf32, #tpu.memory_space<vmem>>, %arg10: memref<32x32xf32, #tpu.memory_space<vmem>>, %arg11: memref<32x32xf32, #tpu.memory_space<vmem>>) attributes {dimension_semantics = [#tpu.dimension_semantics<parallel>, #tpu.dimension_semantics<arbitrary>], iteration_bounds = array<i64: 1, 1>, scalar_prefetch = 0 : i64, scratch_operands = 2 : i64, tpu.core_type = #tpu.core_type<tc>, window_params = [{transform_indices = @transform_0, window_bounds = array<i64: 32, 32>}, {pipeline_mode = #tpu.pipeline_mode<synchronous>, transform_indices = @transform_1, window_bounds = array<i64: 1, 32>}, {pipeline_mode = #tpu.pipeline_mode<synchronous>, transform_indices = @transform_2, window_bounds = array<i64: 1, 32>}, {transform_indices = @transform_3, window_bounds = array<i64: 32, 128>}, {transform_indices = @transform_4, window_bounds = array<i64: 1, 128>}, {transform_indices = @transform_5, window_bounds = array<i64: 128, 32>}, {pipeline_mode = #tpu.pipeline_mode<synchronous>, transform_indices = @transform_6, window_bounds = array<i64: 1, 32>}, {transform_indices = @transform_7, window_bounds = array<i64: 32, 32>}]} {
    %c0_i32 = arith.constant 0 : i32
    %0 = arith.cmpi eq, %arg1, %c0_i32 : i32
    %1 = arith.extui %0 : i1 to i32
    %c0_i32_0 = arith.constant 0 : i32
    %2 = arith.cmpi ne, %1, %c0_i32_0 : i32
    scf.if %2 {
      %c0_19 = arith.constant 0 : index
      %c0_20 = arith.constant 0 : index
      %32 = vector.load %arg2[%c0_19, %c0_20] : memref<32x32xf32, #tpu.memory_space<vmem>>, vector<32x32xf32>
      %c0_21 = arith.constant 0 : index
      %c0_22 = arith.constant 0 : index
      %33 = vector.load %arg3[%c0_21, %c0_22] : memref<1x32xf32, #tpu.memory_space<vmem>>, vector<1x32xf32>
      %c0_23 = arith.constant 0 : index
      %c0_24 = arith.constant 0 : index
      %34 = vector.load %arg4[%c0_23, %c0_24] : memref<1x32xf32, #tpu.memory_space<vmem>>, vector<1x32xf32>
      %cst_25 = arith.constant dense<0.000000e+00> : vector<32xf32>
      %35 = vector.multi_reduction <add>, %32, %cst_25 [1] : vector<32x32xf32> to vector<32xf32>
      %36 = vector.shape_cast %35 : vector<32xf32> to vector<32x1xf32>
      %cst_26 = arith.constant 3.200000e+01 : f32
      %37 = vector.broadcast %cst_26 : f32 to vector<32x1xf32>
      %38 = arith.divf %36, %37 : vector<32x1xf32>
      %39 = vector.broadcast %38 : vector<32x1xf32> to vector<32x32xf32>
      %40 = arith.subf %32, %39 : vector<32x32xf32>
      %41 = arith.mulf %40, %40 : vector<32x32xf32>
      %cst_27 = arith.constant dense<0.000000e+00> : vector<32xf32>
      %42 = vector.multi_reduction <add>, %41, %cst_27 [1] : vector<32x32xf32> to vector<32xf32>
      %43 = vector.shape_cast %42 : vector<32xf32> to vector<32x1xf32>
      %cst_28 = arith.constant 3.200000e+01 : f32
      %44 = vector.broadcast %cst_28 : f32 to vector<32x1xf32>
      %45 = arith.divf %43, %44 : vector<32x1xf32>
      %46 = vector.broadcast %38 : vector<32x1xf32> to vector<32x32xf32>
      %47 = arith.subf %32, %46 : vector<32x32xf32>
      %cst_29 = arith.constant 9.99999974E-6 : f32
      %48 = vector.broadcast %cst_29 : f32 to vector<32x1xf32>
      %49 = arith.addf %45, %48 : vector<32x1xf32>
      %50 = math.rsqrt %49 : vector<32x1xf32>
      %51 = vector.broadcast %50 : vector<32x1xf32> to vector<32x32xf32>
      %52 = arith.mulf %47, %51 : vector<32x32xf32>
      %53 = vector.broadcast %33 : vector<1x32xf32> to vector<32x32xf32>
      %54 = arith.mulf %52, %53 : vector<32x32xf32>
      %55 = vector.broadcast %34 : vector<1x32xf32> to vector<32x32xf32>
      %56 = arith.addf %54, %55 : vector<32x32xf32>
      %c0_30 = arith.constant 0 : index
      %c0_31 = arith.constant 0 : index
      %57 = vector.load %arg10[%c0_30, %c0_31] : memref<32x32xf32, #tpu.memory_space<vmem>>, vector<32x32xf32>
      tpu.vector_store %arg10[%c0_30, %c0_31], %56 {strides = array<i32>} : memref<32x32xf32, #tpu.memory_space<vmem>>, vector<32x32xf32>,
      %cst_32 = arith.constant 0.000000e+00 : f32
      %58 = vector.broadcast %cst_32 : f32 to vector<32x32xf32>
      %c0_33 = arith.constant 0 : index
      %c0_34 = arith.constant 0 : index
      %59 = vector.load %arg11[%c0_33, %c0_34] : memref<32x32xf32, #tpu.memory_space<vmem>>, vector<32x32xf32>
      tpu.vector_store %arg11[%c0_33, %c0_34], %58 {strides = array<i32>} : memref<32x32xf32, #tpu.memory_space<vmem>>, vector<32x32xf32>,
    } else {
    }
    %c0 = arith.constant 0 : index
    %c0_1 = arith.constant 0 : index
    %3 = vector.load %arg10[%c0, %c0_1] : memref<32x32xf32, #tpu.memory_space<vmem>>, vector<32x32xf32>
    %4 = arith.truncf %3 : vector<32x32xf32> to vector<32x32xbf16>
    %c0_2 = arith.constant 0 : index
    %c0_3 = arith.constant 0 : index
    %5 = vector.load %arg5[%c0_2, %c0_3] : memref<32x128xbf16, #tpu.memory_space<vmem>>, vector<32x128xbf16>
    %cst = arith.constant dense<0.000000e+00> : vector<32x128xf32>
    %6 = tpu.matmul %4, %5, %cst {dimension_numbers = #tpu.dot_dimension_numbers<[1], [0], [0], [1], [0, 0, 1, 1], [], []>} : vector<32x32xbf16>, vector<32x128xbf16>, vector<32x128xf32> -> vector<32x128xf32>
    %c0_4 = arith.constant 0 : index
    %c0_5 = arith.constant 0 : index
    %7 = vector.load %arg6[%c0_4, %c0_5] : memref<1x128xf32, #tpu.memory_space<vmem>>, vector<1x128xf32>
    %8 = vector.broadcast %7 : vector<1x128xf32> to vector<32x128xf32>
    %9 = arith.addf %6, %8 : vector<32x128xf32>
    %cst_6 = arith.constant 5.000000e-01 : f32
    %10 = vector.broadcast %cst_6 : f32 to vector<32x128xf32>
    %11 = arith.mulf %10, %9 : vector<32x128xf32>
    %cst_7 = arith.constant 4.471500e-02 : f32
    %12 = vector.broadcast %cst_7 : f32 to vector<32x128xf32>
    %13 = arith.mulf %12, %9 : vector<32x128xf32>
    %14 = arith.mulf %13, %9 : vector<32x128xf32>
    %15 = arith.mulf %14, %9 : vector<32x128xf32>
    %16 = arith.addf %9, %15 : vector<32x128xf32>
    %cst_8 = arith.constant 0.797884583 : f32
    %17 = vector.broadcast %cst_8 : f32 to vector<32x128xf32>
    %18 = arith.mulf %17, %16 : vector<32x128xf32>
    %19 = math.tanh %18 : vector<32x128xf32>
    %cst_9 = arith.constant 1.000000e+00 : f32
    %20 = vector.broadcast %cst_9 : f32 to vector<32x128xf32>
    %21 = arith.addf %20, %19 : vector<32x128xf32>
    %22 = arith.mulf %11, %21 : vector<32x128xf32>
    %c0_10 = arith.constant 0 : index
    %c0_11 = arith.constant 0 : index
    %23 = vector.load %arg11[%c0_10, %c0_11] : memref<32x32xf32, #tpu.memory_space<vmem>>, vector<32x32xf32>
    %24 = arith.truncf %22 : vector<32x128xf32> to vector<32x128xbf16>
    %c0_12 = arith.constant 0 : index
    %c0_13 = arith.constant 0 : index
    %25 = vector.load %arg7[%c0_12, %c0_13] : memref<128x32xbf16, #tpu.memory_space<vmem>>, vector<128x32xbf16>
    %cst_14 = arith.constant dense<0.000000e+00> : vector<32x32xf32>
    %26 = tpu.matmul %24, %25, %cst_14 {dimension_numbers = #tpu.dot_dimension_numbers<[1], [0], [0], [1], [0, 0, 1, 1], [], []>} : vector<32x128xbf16>, vector<128x32xbf16>, vector<32x32xf32> -> vector<32x32xf32>
    %27 = arith.addf %23, %26 : vector<32x32xf32>
    %c0_15 = arith.constant 0 : index
    %c0_16 = arith.constant 0 : index
    %28 = vector.load %arg11[%c0_15, %c0_16] : memref<32x32xf32, #tpu.memory_space<vmem>>, vector<32x32xf32>
    tpu.vector_store %arg11[%c0_15, %c0_16], %27 {strides = array<i32>} : memref<32x32xf32, #tpu.memory_space<vmem>>, vector<32x32xf32>,
    %c0_i32_17 = arith.constant 0 : i32
    %29 = arith.cmpi eq, %arg1, %c0_i32_17 : i32
    %30 = arith.extui %29 : i1 to i32
    %c0_i32_18 = arith.constant 0 : i32
    %31 = arith.cmpi ne, %30, %c0_i32_18 : i32
    scf.if %31 {
      %c0_19 = arith.constant 0 : index
      %c0_20 = arith.constant 0 : index
      %32 = vector.load %arg2[%c0_19, %c0_20] : memref<32x32xf32, #tpu.memory_space<vmem>>, vector<32x32xf32>
      %c0_21 = arith.constant 0 : index
      %c0_22 = arith.constant 0 : index
      %33 = vector.load %arg11[%c0_21, %c0_22] : memref<32x32xf32, #tpu.memory_space<vmem>>, vector<32x32xf32>
      %34 = arith.addf %32, %33 : vector<32x32xf32>
      %c0_23 = arith.constant 0 : index
      %c0_24 = arith.constant 0 : index
      %35 = vector.load %arg8[%c0_23, %c0_24] : memref<1x32xf32, #tpu.memory_space<vmem>>, vector<1x32xf32>
      %36 = vector.broadcast %35 : vector<1x32xf32> to vector<32x32xf32>
      %37 = arith.addf %34, %36 : vector<32x32xf32>
      %c0_25 = arith.constant 0 : index
      %c0_26 = arith.constant 0 : index
      %38 = vector.load %arg9[%c0_25, %c0_26] : memref<32x32xf32, #tpu.memory_space<vmem>>, vector<32x32xf32>
      tpu.vector_store %arg9[%c0_25, %c0_26], %37 {strides = array<i32>} : memref<32x32xf32, #tpu.memory_space<vmem>>, vector<32x32xf32>,
    } else {
    }
    return
  }
  func.func @transform_0(%arg0: i32, %arg1: i32) -> (i32, i32) {
    %c0_i32 = arith.constant 0 : i32
    %c0_i32_0 = arith.constant 0 : i32
    return %arg0, %c0_i32 : i32, i32
  }
  func.func @transform_1(%arg0: i32, %arg1: i32) -> (i32, i32) {
    %c0_i32 = arith.constant 0 : i32
    %c0_i32_0 = arith.constant 0 : i32
    %c0_i32_1 = arith.constant 0 : i32
    return %c0_i32, %c0_i32_0 : i32, i32
  }
  func.func @transform_2(%arg0: i32, %arg1: i32) -> (i32, i32) {
    %c0_i32 = arith.constant 0 : i32
    %c0_i32_0 = arith.constant 0 : i32
    %c0_i32_1 = arith.constant 0 : i32
    return %c0_i32, %c0_i32_0 : i32, i32
  }
  func.func @transform_3(%arg0: i32, %arg1: i32) -> (i32, i32) {
    %c0_i32 = arith.constant 0 : i32
    %c0_i32_0 = arith.constant 0 : i32
    return %c0_i32, %arg1 : i32, i32
  }
  func.func @transform_4(%arg0: i32, %arg1: i32) -> (i32, i32) {
    %c0_i32 = arith.constant 0 : i32
    %c0_i32_0 = arith.constant 0 : i32
    return %c0_i32, %arg1 : i32, i32
  }
  func.func @transform_5(%arg0: i32, %arg1: i32) -> (i32, i32) {
    %c0_i32 = arith.constant 0 : i32
    %c0_i32_0 = arith.constant 0 : i32
    return %arg1, %c0_i32 : i32, i32
  }
  func.func @transform_6(%arg0: i32, %arg1: i32) -> (i32, i32) {
    %c0_i32 = arith.constant 0 : i32
    %c0_i32_0 = arith.constant 0 : i32
    %c0_i32_1 = arith.constant 0 : i32
    return %c0_i32, %c0_i32_0 : i32, i32
  }
  func.func @transform_7(%arg0: i32, %arg1: i32) -> (i32, i32) {
    %c0_i32 = arith.constant 0 : i32
    %c0_i32_0 = arith.constant 0 : i32
    return %arg0, %c0_i32 : i32, i32
  }
}

module attributes {stable_mosaic.version = 11 : i64} {
  func.func @_ln_readout_kernel(%arg0: i32, %arg1: memref<32x32xf32, #tpu.memory_space<vmem>>, %arg2: memref<1x32xf32, #tpu.memory_space<vmem>>, %arg3: memref<1x32xf32, #tpu.memory_space<vmem>>, %arg4: memref<1x32xf32, #tpu.memory_space<vmem>>, %arg5: memref<1x1xf32, #tpu.memory_space<vmem>>, %arg6: memref<32x1xf32, #tpu.memory_space<vmem>>) attributes {dimension_semantics = [#tpu.dimension_semantics<parallel>], iteration_bounds = array<i64: 1>, scalar_prefetch = 0 : i64, scratch_operands = 0 : i64, tpu.core_type = #tpu.core_type<tc>, window_params = [{transform_indices = @transform_0, window_bounds = array<i64: 32, 32>}, {pipeline_mode = #tpu.pipeline_mode<synchronous>, transform_indices = @transform_1, window_bounds = array<i64: 1, 32>}, {pipeline_mode = #tpu.pipeline_mode<synchronous>, transform_indices = @transform_2, window_bounds = array<i64: 1, 32>}, {pipeline_mode = #tpu.pipeline_mode<synchronous>, transform_indices = @transform_3, window_bounds = array<i64: 1, 32>}, {pipeline_mode = #tpu.pipeline_mode<synchronous>, transform_indices = @transform_4, window_bounds = array<i64: 1, 1>}, {transform_indices = @transform_5, window_bounds = array<i64: 32, 1>}]} {
    %c0 = arith.constant 0 : index
    %c0_0 = arith.constant 0 : index
    %0 = vector.load %arg1[%c0, %c0_0] : memref<32x32xf32, #tpu.memory_space<vmem>>, vector<32x32xf32>
    %c0_1 = arith.constant 0 : index
    %c0_2 = arith.constant 0 : index
    %1 = vector.load %arg2[%c0_1, %c0_2] : memref<1x32xf32, #tpu.memory_space<vmem>>, vector<1x32xf32>
    %c0_3 = arith.constant 0 : index
    %c0_4 = arith.constant 0 : index
    %2 = vector.load %arg3[%c0_3, %c0_4] : memref<1x32xf32, #tpu.memory_space<vmem>>, vector<1x32xf32>
    %cst = arith.constant dense<0.000000e+00> : vector<32xf32>
    %3 = vector.multi_reduction <add>, %0, %cst [1] : vector<32x32xf32> to vector<32xf32>
    %4 = vector.shape_cast %3 : vector<32xf32> to vector<32x1xf32>
    %cst_5 = arith.constant 3.200000e+01 : f32
    %5 = vector.broadcast %cst_5 : f32 to vector<32x1xf32>
    %6 = arith.divf %4, %5 : vector<32x1xf32>
    %7 = vector.broadcast %6 : vector<32x1xf32> to vector<32x32xf32>
    %8 = arith.subf %0, %7 : vector<32x32xf32>
    %9 = arith.mulf %8, %8 : vector<32x32xf32>
    %cst_6 = arith.constant dense<0.000000e+00> : vector<32xf32>
    %10 = vector.multi_reduction <add>, %9, %cst_6 [1] : vector<32x32xf32> to vector<32xf32>
    %11 = vector.shape_cast %10 : vector<32xf32> to vector<32x1xf32>
    %cst_7 = arith.constant 3.200000e+01 : f32
    %12 = vector.broadcast %cst_7 : f32 to vector<32x1xf32>
    %13 = arith.divf %11, %12 : vector<32x1xf32>
    %14 = vector.broadcast %6 : vector<32x1xf32> to vector<32x32xf32>
    %15 = arith.subf %0, %14 : vector<32x32xf32>
    %cst_8 = arith.constant 9.99999974E-6 : f32
    %16 = vector.broadcast %cst_8 : f32 to vector<32x1xf32>
    %17 = arith.addf %13, %16 : vector<32x1xf32>
    %18 = math.rsqrt %17 : vector<32x1xf32>
    %19 = vector.broadcast %18 : vector<32x1xf32> to vector<32x32xf32>
    %20 = arith.mulf %15, %19 : vector<32x32xf32>
    %21 = vector.broadcast %1 : vector<1x32xf32> to vector<32x32xf32>
    %22 = arith.mulf %20, %21 : vector<32x32xf32>
    %23 = vector.broadcast %2 : vector<1x32xf32> to vector<32x32xf32>
    %24 = arith.addf %22, %23 : vector<32x32xf32>
    %c0_9 = arith.constant 0 : index
    %c0_10 = arith.constant 0 : index
    %25 = vector.load %arg4[%c0_9, %c0_10] : memref<1x32xf32, #tpu.memory_space<vmem>>, vector<1x32xf32>
    %26 = vector.broadcast %25 : vector<1x32xf32> to vector<32x32xf32>
    %27 = arith.mulf %24, %26 : vector<32x32xf32>
    %cst_11 = arith.constant dense<0.000000e+00> : vector<32xf32>
    %28 = vector.multi_reduction <add>, %27, %cst_11 [1] : vector<32x32xf32> to vector<32xf32>
    %29 = vector.shape_cast %28 : vector<32xf32> to vector<32x1xf32>
    %c0_12 = arith.constant 0 : index
    %c0_13 = arith.constant 0 : index
    %30 = vector.load %arg5[%c0_12, %c0_13] : memref<1x1xf32, #tpu.memory_space<vmem>>, vector<1x1xf32>
    %31 = vector.broadcast %30 : vector<1x1xf32> to vector<32x1xf32>
    %32 = arith.addf %29, %31 : vector<32x1xf32>
    %c0_14 = arith.constant 0 : index
    %c0_15 = arith.constant 0 : index
    %33 = vector.load %arg6[%c0_14, %c0_15] : memref<32x1xf32, #tpu.memory_space<vmem>>, vector<32x1xf32>
    tpu.vector_store %arg6[%c0_14, %c0_15], %32 {strides = array<i32>} : memref<32x1xf32, #tpu.memory_space<vmem>>, vector<32x1xf32>,
    return
  }
  func.func @transform_0(%arg0: i32) -> (i32, i32) {
    %c0_i32 = arith.constant 0 : i32
    %c0_i32_0 = arith.constant 0 : i32
    return %arg0, %c0_i32 : i32, i32
  }
  func.func @transform_1(%arg0: i32) -> (i32, i32) {
    %c0_i32 = arith.constant 0 : i32
    %c0_i32_0 = arith.constant 0 : i32
    %c0_i32_1 = arith.constant 0 : i32
    return %c0_i32, %c0_i32_0 : i32, i32
  }
  func.func @transform_2(%arg0: i32) -> (i32, i32) {
    %c0_i32 = arith.constant 0 : i32
    %c0_i32_0 = arith.constant 0 : i32
    %c0_i32_1 = arith.constant 0 : i32
    return %c0_i32, %c0_i32_0 : i32, i32
  }
  func.func @transform_3(%arg0: i32) -> (i32, i32) {
    %c0_i32 = arith.constant 0 : i32
    %c0_i32_0 = arith.constant 0 : i32
    %c0_i32_1 = arith.constant 0 : i32
    return %c0_i32, %c0_i32_0 : i32, i32
  }
  func.func @transform_4(%arg0: i32) -> (i32, i32) {
    %c0_i32 = arith.constant 0 : i32
    %c0_i32_0 = arith.constant 0 : i32
    %c0_i32_1 = arith.constant 0 : i32
    return %c0_i32, %c0_i32_0 : i32, i32
  }
  func.func @transform_5(%arg0: i32) -> (i32, i32) {
    %c0_i32 = arith.constant 0 : i32
    %c0_i32_0 = arith.constant 0 : i32
    return %arg0, %c0_i32 : i32, i32
  }
}

</mosaic_0001>

<bundles_post_ra>
// kernel: transformer_forward.8
= control target key start
LH: loop header
LB: loop body
LE: loop exit
PB: predicated region body
PF: predicated region fallthrough
CT: control target
= control target key end

     0   :  { %s389_s15 = smov 0   ;;  %s425_s0 = inlined_call_operand.vmem [shape: f32[2,16,4], index: 0, kind: input, shape index: {}]   ;;  %s426_s1 = inlined_call_operand.vmem [shape: f32[4,32], index: 1, kind: input, shape index: {}]   ;;  %s427_s2 = inlined_call_operand.vmem [shape: f32[1,32], index: 2, kind: input, shape index: {}]   ;;  %s428_s3 = inlined_call_operand.vmem [shape: f32[16,32], index: 3, kind: input, shape index: {}]   ;;  %s429_s4 = inlined_call_operand.vmem [shape: f32[2,16,32], index: 4, kind: output, shape index: {}]  }
   0x1 LB: > { %s321_s16 = sadd.s32 4294967295, %s358_s15   ;;  %p325_p0 = scmp.ge.s32.totalorder %s358_s15, 1  ;;  %s358_s15 = sphi %s389_s15, %s14_s15  }
   0x2   : > { %p162_p1 = scmp.lt.s32.totalorder %s358_s15, 3 }
   0x4   : > { %p163_p2 = pnand %p325_p0, %p162_p1 }
   0x5   : > { %p188_p3 = scmp.lt.s32.totalorder (!%p163_p2), %s321_s16, 1 }
   0x6   : > { %166 = sbr.rel (%p163_p2) target bundleno = 153 (0x99), region = 36 }
   0xb   : > { %v360_v0 = vmov 1   ;;  %v361_v1 = vmov 0   ;;  %s431_s16 = smov (!%p188_p3, %s321_s16), 1  ;;  %v362_v2 = vmov 2   ;;  %v363_v5 = vmov 3   ;;  %v202_v12 = vld [vmem:[%s428_s3] sm:$0xff] }
   0xc   : > { %347 = vset.pattern.permute.xlu1 %v360_v0  ;;  %346 = vset.pattern.permute.xlu0 %v361_v1  ;;  %s332_s17 = sshll.u32 %s431_s16, 4  ;;  %v200_v6 = vld [vmem:[%s426_s1] sm:$0xf]  ;;  %v203_v13 = vld [vmem:[%s428_s3 + $0x8] sm:$0xff]  ;;  %vm263_vm0 = vcmask 261120  }
   0xd   : > { %348 = vset.pattern.permute.xlu2 %v362_v2  ;;  %s192_s20 = scalar_lea.vmem %s425_s0, %s332_s17  ;;  %v351_v9 = vld [vmem:[%s427_s2] ss:$0 sm:$0xff]  ;;  %v219_v10 = vperm.slane %v200_v6, 0  ;;  %v232_v17 = vperm.slane %v200_v6, 1  ;;  %v245_v21 = vperm.slane %v200_v6, 2  ;;  %v258_v30 = vperm.slane %v200_v6, 3  ;;  %s197_s5 = scalar_lea.vmem %s429_s4, %s332_s17 }
   0xe   : > { %v198_v3 = vld [vmem:[%s192_s20] sm:$0xff]  ;;  %v199_v4 = vld [vmem:[%s192_s20 + $0x8] sm:$0xff]  ;;  %v207_v14 = vadd.f32 %v351_v9, %v202_v12  ;;  %v208_v16 = vadd.f32 %v351_v9, %v203_v13 }
   0xf   : > { %225 = vperm.xlu1 %347, %v198_v3   ;;  %211 = vperm.xlu0 %346, %v198_v3  }
  0x10   : > { %238 = vperm.xlu2 %348, %v198_v3  }
  0x17   : > { %229 = vperm.xlu1 %347, %v199_v4   ;;  %216 = vperm.xlu0 %346, %v199_v4  }
  0x18   : > { %242 = vperm.xlu2 %348, %v199_v4  }
  0x1f   : > { %350 = vset.pattern.permute.xlu1 %v363_v5  ;;  %349 = vset.pattern.permute.xlu0 %v363_v5 }
  0x20   : > { %255 = vperm.xlu1 %350, %v199_v4   ;;  %251 = vperm.xlu0 %349, %v198_v3  }
  0x6a   : > { %v239_v11 = vpop.permute.xlu2 %238 }
  0x6b   : > { %v246_v27 = vmul.f32 %v245_v21, %v239_v11 }
  0x72   : > { %v243_v26 = vpop.permute.xlu2 %242 }
  0x73   : > { %v247_v31 = vmul.f32 %v245_v21, %v243_v26 }
  0x81   : > { %v226_v7 = vpop.permute.xlu1 %225  ;;  %v212_v8 = vpop.permute.xlu0 %211 }
  0x82   : > { %v220_v15 = vmul.f32 %v219_v10, %v212_v8  ;;  %v233_v24 = vmul.f32 %v232_v17, %v226_v7 }
  0x84   : > { %v222_v22 = vadd.f32 %v220_v15, %v207_v14 }
  0x86   : > { %v235_v28 = vadd.f32 %v233_v24, %v222_v22 }
  0x88   : > { %v248_v36 = vadd.f32 %v246_v27, %v235_v28 }
  0x89   : > { %v230_v18 = vpop.permute.xlu1 %229  ;;  %v217_v19 = vpop.permute.xlu0 %216 }
  0x8a   : > { %v221_v20 = vmul.f32 %v219_v10, %v217_v19  ;;  %v234_v25 = vmul.f32 %v232_v17, %v230_v18 }
  0x8c   : > { %v223_v23 = vadd.f32 %v221_v20, %v208_v16 }
  0x8e   : > { %v236_v29 = vadd.f32 %v234_v25, %v223_v23 }
  0x90   : > { %v249_v34 = vadd.f32 %v247_v31, %v236_v29 }
  0x92   : > { %v256_v32 = vpop.permute.xlu1 %255  ;;  %v252_v33 = vpop.permute.xlu0 %251 }
  0x93   : > { %v260_v35 = vmul.f32 %v258_v30, %v256_v32  ;;  %v259_v37 = vmul.f32 %v258_v30, %v252_v33 }
  0x95   : > { %v262_v38 = vadd.f32 %v260_v35, %v249_v34  ;;  %v261_v39 = vadd.f32 %v259_v37, %v248_v36 }
  0x97   : > { %265 = vst.msk [vmem:[%s197_s5 + $0x8] sm:$0xff] %vm263_vm0, %v262_v38 }
  0x98   : > { %264 = vst.msk [vmem:[%s197_s5] sm:$0xff] %vm263_vm0, %v261_v39 }
  0x99 PF: > { %s14_s15 = sadd.s32 1, %s358_s15  }
  0x9a   : > { %p11_p4 = scmp.ge.s32.totalorder %s14_s15, 4  }
  0x9c   :  { %13 = sbr.rel (!%p11_p4) target bundleno = 1 (0x1), region = 66 }

// kernel: transformer_forward.9
= control target key start
LH: loop header
LB: loop body
LE: loop exit
PB: predicated region body
PF: predicated region fallthrough
CT: control target
= control target key end

     0   :  { %vm31_vm0 = vcmask 261120   ;;  %v238_v8 = vmov 32.0   ;;  %vm201_vm14 = vcmask 781312   ;;  %s342_s0 = inlined_call_operand.vmem [shape: f32[32,32], index: 0, kind: input, shape index: {}]   ;;  %s343_s1 = inlined_call_operand.vmem [shape: f32[1,32], index: 1, kind: input, shape index: {}]   ;;  %s344_s2 = inlined_call_operand.vmem [shape: f32[1,32], index: 2, kind: input, shape index: {}]   ;;  %s345_s4 = inlined_call_operand.vmem [shape: f32[1,96], index: 4, kind: input, shape index: {}]   ;;  %s346_s3 = inlined_call_operand.vmem [shape: bf16[32,96], index: 3, kind: input, shape index: {}]   ;;  %s347_s5 = inlined_call_operand.vmem [shape: bf16[32,96], index: 5, kind: output, shape index: {}]  }
   0x1   :  { %v27_v0 = vld [vmem:[%s342_s0 + $0x10] sm:$0xff]  ;;  %v25_v1 = vld [vmem:[%s342_s0] sm:$0xff]  ;;  %v28_v4 = vld [vmem:[%s342_s0 + $0x18] sm:$0xff]  ;;  %228 = vrcp.f32 %v238_v8 }
   0x2   :  { %v38_v2 = vsel %vm31_vm0, %v27_v0, 0.0  ;;  %v32_v3 = vsel %vm31_vm0, %v25_v1, 0.0  ;;  %v26_v5 = vld [vmem:[%s342_s0 + $0x8] sm:$0xff]  ;;  %v41_v6 = vsel %vm31_vm0, %v28_v4, 0.0  ;;  %v220_v44 = vld [vmem:[%s346_s3] sm:$0xff] }
   0x3   :  { %39 = vadd.xlane.f32.xlu1 %v38_v2  ;;  %33 = vadd.xlane.f32.xlu0 %v32_v3  ;;  %v35_v7 = vsel %vm31_vm0, %v26_v5, 0.0  ;;  %v221_v41 = vld [vmem:[%s346_s3 + $0x8] sm:$0xff]  ;;  %v225_v63 = vld [vmem:[%s343_s1] ss:$0 sm:$0xff] }
   0x4   :  { %184 = vmatpush.bf16.msra.mxu0 %v221_v41  ;;  %222 = vmatpush.bf16.msra.mxu1 %v221_v41 }
   0x7   :  { %v229_v9 = vpop.eup %228 }
   0x8   :  { %v45_v10 = vmul.f32 32.0, %v229_v9  ;;  %vm49_vm1 = vweird.f32 %v229_v9  ;;  %185 = vmatpush.bf16.msra.mxu0 %v220_v44  ;;  %223 = vmatpush.bf16.msra.mxu1 %v220_v44 }
   0xa   :  { %v46_v11 = vsub.f32 1.0, %v45_v10 }
   0xb   :  { %42 = vadd.xlane.f32.xlu1 %v41_v6  ;;  %36 = vadd.xlane.f32.xlu0 %v35_v7 }
   0xc   :  { %v47_v12 = vmul.f32 %v229_v9, %v46_v11 }
   0xe   :  { %v48_v13 = vadd.f32 %v229_v9, %v47_v12 }
  0x10   :  { %v50_v14 = vsel %vm49_vm1, %v229_v9, %v48_v13 }
  0x76   :  { %v40_v15 = vpop.xlane.xlu1 %39  ;;  %v34_v16 = vpop.xlane.xlu0 %33 }
  0x77   :  { %v53_v17 = vmul.f32 %v50_v14, %v40_v15  ;;  %v51_v18 = vmul.f32 %v50_v14, %v34_v16 }
  0x79   :  { %v285_v19 = vsub.f32 %v27_v0, %v53_v17  ;;  %v287_v20 = vsub.f32 %v25_v1, %v51_v18 }
  0x7b   :  { %v61_v21 = vmul.f32 %v285_v19, %v285_v19  ;;  %v59_v22 = vmul.f32 %v287_v20, %v287_v20 }
  0x7d   :  { %v69_v23 = vsel %vm31_vm0, %v61_v21, 0.0  ;;  %v63_v24 = vsel %vm31_vm0, %v59_v22, 0.0 }
  0x7e   :  { %v43_v25 = vpop.xlane.xlu1 %42  ;;  %70 = vadd.xlane.f32.xlu0 %v69_v23  ;;  %64 = vadd.xlane.f32.xlu2 %v63_v24  ;;  %v37_v26 = vpop.xlane.xlu0 %36 }
  0x7f   :  { %v54_v27 = vmul.f32 %v50_v14, %v43_v25  ;;  %v52_v28 = vmul.f32 %v50_v14, %v37_v26 }
  0x81   :  { %v295_v29 = vsub.f32 %v28_v4, %v54_v27  ;;  %v297_v30 = vsub.f32 %v26_v5, %v52_v28  ;;  %v226_v4 = vld [vmem:[%s344_s2] ss:$0 sm:$0xff] }
  0x83   :  { %v62_v31 = vmul.f32 %v295_v29, %v295_v29  ;;  %v60_v32 = vmul.f32 %v297_v30, %v297_v30 }
  0x85   :  { %v72_v33 = vsel %vm31_vm0, %v62_v31, 0.0  ;;  %v66_v34 = vsel %vm31_vm0, %v60_v32, 0.0 }
  0x86   :  { %73 = vadd.xlane.f32.xlu1 %v72_v33  ;;  %67 = vadd.xlane.f32.xlu2 %v66_v34 }
  0xf1   :  { %v65_v35 = vpop.xlane.xlu2 %64  ;;  %v71_v36 = vpop.xlane.xlu0 %70 }
  0xf2   :  { %v75_v37 = vmul.f32 %v65_v35, %v50_v14  ;;  %v77_v38 = vmul.f32 %v71_v36, %v50_v14 }
  0xf4   :  { %v79_v39 = vadd.f32 1e-05, %v75_v37  ;;  %v81_v40 = vadd.f32 1e-05, %v77_v38 }
  0xf6   :  { %230 = vrsqrt.f32 %v79_v39  ;;  %vm89_vm4 = vweird.f32 %v79_v39  ;;  %vm109_vm6 = vweird.f32 %v81_v40 }
  0xf7   :  { %232 = vrsqrt.f32 %v81_v40 }
  0xf9   :  { %v74_v42 = vpop.xlane.xlu1 %73  ;;  %v68_v43 = vpop.xlane.xlu2 %67 }
  0xfa   :  { %v78_v45 = vmul.f32 %v74_v42, %v50_v14  ;;  %v76_v46 = vmul.f32 %v68_v43, %v50_v14 }
  0xfc   :  { %v231_v47 = vpop.eup %230  ;;  %v82_v48 = vadd.f32 1e-05, %v78_v45  ;;  %v80_v49 = vadd.f32 1e-05, %v76_v46 }
  0xfd   :  { %v233_v50 = vpop.eup %232  ;;  %v84_v51 = vmul.f32 %v231_v47, %v79_v39  ;;  %vm90_vm2 = vweird.f32 %v231_v47 }
  0xfe   :  { %v104_v52 = vmul.f32 %v233_v50, %v81_v40  ;;  %234 = vrsqrt.f32 %v82_v48  ;;  %vm110_vm3 = vweird.f32 %v233_v50  ;;  %vm91_vm5 = vmor %vm89_vm4, %vm90_vm2  ;;  %vm119_vm10 = vweird.f32 %v82_v48 }
  0xff   :  { %v85_v53 = vmul.f32 %v231_v47, %v84_v51  ;;  %236 = vrsqrt.f32 %v80_v49  ;;  %vm111_vm7 = vmor %vm109_vm6, %vm110_vm3  ;;  %vm99_vm12 = vweird.f32 %v80_v49 }
 0x100   :  { %v105_v54 = vmul.f32 %v233_v50, %v104_v52 }
 0x101   :  { %v86_v55 = vmul.f32 0.5, %v85_v53 }
 0x102   :  { %v106_v56 = vmul.f32 0.5, %v105_v54 }
 0x103   :  { %v87_v57 = vsub.f32 1.5, %v86_v55 }
 0x104   :  { %v235_v58 = vpop.eup %234  ;;  %v107_v59 = vsub.f32 1.5, %v106_v56 }
 0x105   :  { %v237_v60 = vpop.eup %236  ;;  %v88_v61 = vmul.f32 %v231_v47, %v87_v57  ;;  %v114_v62 = vmul.f32 %v235_v58, %v82_v48  ;;  %vm120_vm8 = vweird.f32 %v235_v58 }
 0x106   :  { %v108_v0 = vmul.f32 %v233_v50, %v107_v59  ;;  %v94_v1 = vmul.f32 %v237_v60, %v80_v49  ;;  %vm100_vm9 = vweird.f32 %v237_v60  ;;  %vm121_vm11 = vmor %vm119_vm10, %vm120_vm8 }
 0x107   :  { %v92_v2 = vsel %vm91_vm5, %v231_v47, %v88_v61  ;;  %v115_v3 = vmul.f32 %v235_v58, %v114_v62  ;;  %vm101_vm13 = vmor %vm99_vm12, %vm100_vm9 }
 0x108   :  { %v123_v5 = vmul.f32 %v92_v2, %v287_v20  ;;  %v112_v6 = vsel %vm111_vm7, %v233_v50, %v108_v0  ;;  %v95_v7 = vmul.f32 %v237_v60, %v94_v1 }
 0x109   :  { %v125_v8 = vmul.f32 %v112_v6, %v285_v19  ;;  %v116_v9 = vmul.f32 0.5, %v115_v3 }
 0x10a   :  { %v130_v10 = vmul.f32 %v225_v63, %v123_v5  ;;  %v96_v11 = vmul.f32 0.5, %v95_v7 }
 0x10b   :  { %v132_v12 = vmul.f32 %v225_v63, %v125_v8  ;;  %v117_v13 = vsub.f32 1.5, %v116_v9 }
 0x10c   :  { %v137_v14 = vadd.f32 %v226_v4, %v130_v10  ;;  %v97_v15 = vsub.f32 1.5, %v96_v11 }
 0x10d   :  { %v139_v16 = vadd.f32 %v226_v4, %v132_v12  ;;  %v118_v17 = vmul.f32 %v235_v58, %v117_v13 }
 0x10e   :  { %141 = vst.msk [vmem:[#allocation2] sm:$0xff] %vm31_vm0, %v137_v14  ;;  %v98_v18 = vmul.f32 %v237_v60, %v97_v15 }
 0x10f   :  { %143 = vst.msk [vmem:[#allocation2 + $0x10] sm:$0xff] %vm31_vm0, %v139_v16  ;;  %v122_v19 = vsel %vm121_vm11, %v235_v58, %v118_v17 }
 0x110   :  { %v126_v20 = vmul.f32 %v122_v19, %v295_v29  ;;  %v102_v21 = vsel %vm101_vm13, %v237_v60, %v98_v18  ;;  %v227_v29 = vld [vmem:[%s345_s4] ss:$0 sm:$0xff] }
 0x111   :  { %v124_v22 = vmul.f32 %v102_v21, %v297_v30 }
 0x112   :  { %v133_v23 = vmul.f32 %v225_v63, %v126_v20 }
 0x113   :  { %v131_v24 = vmul.f32 %v225_v63, %v124_v22 }
 0x114   :  { %v140_v25 = vadd.f32 %v226_v4, %v133_v23 }
 0x115   :  { %v138_v26 = vadd.f32 %v226_v4, %v131_v24  ;;  %v145_v31 = vld [vmem:[#allocation2] sm:$0xff] }
 0x116   :  { %144 = vst.msk [vmem:[#allocation2 + $0x18] sm:$0xff] %vm31_vm0, %v140_v25  ;;  %v147_v27 = vld [vmem:[#allocation2 + $0x10] sm:$0xff] }
 0x117   :  { %142 = vst.msk [vmem:[#allocation2 + $0x8] sm:$0xff] %vm31_vm0, %v138_v26 }
 0x11d   :  { %v148_v28 = vld [vmem:[#allocation2 + $0x18] sm:$0xff] }
 0x11e   :  { %v146_v32 = vld [vmem:[#allocation2 + $0x8] sm:$0xff]  ;;  %v150_v33 = vpack.c.bf16 %v148_v28, %v147_v27 }
 0x11f   :  { %v149_v34 = vpack.c.bf16 %v146_v32, %v145_v31 }
 0x120   :  { %219 = vmatmul.msk.bf16.vlgmr.msra.gmra.mxu1 %vm31_vm0, %v150_v33 }
 0x121   :  { %218 = vmatmul.msk.bf16.vlgmr.msra.gmra.mxu0 %vm31_vm0, %v149_v34 }
 0x19d   :  { %v192_v30 = vpop.f32.mrf.mxu1 }
 0x19e   :  { %v187_v35 = vpop.f32.mrf.mxu0  ;;  %v193_v36 = vadd.f32 %v227_v29, %v192_v30 }
 0x19f   :  { %v188_v37 = vadd.f32 %v227_v29, %v187_v35 }
 0x1a0   :  { %v199_v38 = vpack.c.bf16 %v193_v36, %v193_v36 }
 0x1a1   :  { %v197_v39 = vpack.c.bf16 %v188_v37, %v188_v37 }
 0x1a2   :  { %204 = vst.msk [vmem:[%s347_s5 + $0x8] sm:$0xf] %vm201_vm14, %v199_v38 }
 0x1a3   :  { %202 = vst.msk [vmem:[%s347_s5] sm:$0xf] %vm201_vm14, %v197_v39 }
 0x1a5   :  { %v194_v40 = vpop.f32.mrf.mxu1 }
 0x1a6   :  { %v189_v41 = vpop.f32.mrf.mxu0  ;;  %v195_v42 = vadd.f32 %v227_v29, %v194_v40 }
 0x1a7   :  { %v190_v43 = vadd.f32 %v227_v29, %v189_v41 }
 0x1a8   :  { %v200_v44 = vpack.c.bf16 %v195_v42, %v195_v42 }
 0x1a9   :  { %v198_v45 = vpack.c.bf16 %v190_v43, %v190_v43 }
 0x1aa   :  { %205 = vst.msk [vmem:[%s347_s5 + $0xc] sm:$0xf] %vm201_vm14, %v200_v44 }
 0x1ab   :  { %203 = vst.msk [vmem:[%s347_s5 + $0x4] sm:$0xf] %vm201_vm14, %v198_v45 }

// kernel: transformer_forward.10
= control target key start
LH: loop header
LB: loop body
LE: loop exit
PB: predicated region body
PF: predicated region fallthrough
CT: control target
= control target key end

     0   :  { %s1016_s18 = smov 0   ;;  %s1018_s19 = smov 0   ;;  %s1162_s0 = inlined_call_operand.vmem [shape: bf16[2,16,96], index: 0, kind: input, shape index: {}, may-alias: {0,1}]   ;;  %s1163_s1 = inlined_call_operand.vmem [shape: bf16[2,16,96], index: 1, kind: input, shape index: {}, may-alias: {0,1}]   ;;  %s1164_s2 = inlined_call_operand.vmem [shape: bf16[32,32], index: 2, kind: input, shape index: {}]   ;;  %s1165_s3 = inlined_call_operand.vmem [shape: f32[1,32], index: 3, kind: input, shape index: {}]   ;;  %s1166_s4 = inlined_call_operand.vmem [shape: f32[2,16,32], index: 4, kind: input, shape index: {}]   ;;  %s1167_s5 = inlined_call_operand.vmem [shape: f32[2,16,32], index: 5, kind: output, shape index: {}]  }
   0x1   :  { %s1020_s20 = smov 0  }
   0x2 LB: > { %s27_s21 = sadd.s32 1, %s966_s19  ;;  %p833_p0 = scmp.ge.s32.totalorder %s970_s20, 1  ;;  %s970_s20 = sphi %s1020_s20, %s15_s20   ;;  %s966_s19 = sphi %s1018_s19, %s1169_s19   ;;  %s962_s18 = sphi %s1016_s18, %s1168_s18  }
   0x3   : > { %p29_p1 = scmp.ge.s32.totalorder %s27_s21, 2  ;;  %p235_p2 = scmp.lt.s32.totalorder %s970_s20, 3 }
   0x5   : > { %s1171_s21 = smov (%p29_p1, %s27_s21), 0  ;;  %p236_p3 = pnand %p833_p0, %p235_p2 }
   0x6   : > { %p286_p4 = scmp.lt.s32.totalorder (!%p236_p3), %s962_s18, 1  ;;  %s972_s26 = smov (!%p236_p3), 96  }
   0x7   : > { %239 = sbr.rel (%p236_p3) target bundleno = 1099 (0x44b), region = 40  ;;  %s973_s27 = smov (!%p236_p3), 88  }
   0x8   : > { %s974_s6 = smov (!%p236_p3), 120   ;;  %s975_s7 = smov (!%p236_p3), 64  }
   0x9   : > { %s976_s8 = smov (!%p236_p3), 80   ;;  %s977_s9 = smov (!%p236_p3), 72  }
   0xa   : > { %s978_s10 = smov (!%p236_p3), 112   ;;  %s979_s11 = smov (!%p236_p3), 56  }
   0xb   : > { %s980_s12 = smov (!%p236_p3), 104   ;;  %s981_s13 = smov (!%p236_p3), 48  }
   0xc   : > { %s1173_s18 = smov (!%p286_p4, %s962_s18), 1  ;;  %vm348_vm0 = vcmask 64512   ;;  %v325_v7 = vlaneseq  ;;  %vm373_vm2 = vcmask 130048   ;;  %s982_s14 = smov 40   ;;  %vm498_vm4 = vcmask 130112  }
   0xd   : > { %s869_s22 = sshll.u32 %s1173_s18, 3  ;;  %s983_s15 = smov 8   ;;  %vm580_vm5 = vcmask 195712   ;;  %vm662_vm6 = vcmask 261312   ;;  %vm688_vm7 = vcmask 261120  }
   0xe   : > { %s299_s25 = scalar_lea.vmem %s1163_s1, %s869_s22  ;;  %s293_s30 = scalar_lea.vmem %s1162_s0, %s869_s22  ;;  %v1054_v8 = vshrl.u32 %v325_v7, 7  ;;  %v1056_v9 = vand.u32 127, %v325_v7 }
   0xf   : > { %v1040_v0 = vld [vmem:[%s299_s25] sm:$0xff]  ;;  %s984_s16 = smov 24   ;;  %s985_s17 = smov 16  }
  0x10   : > { %346 = vrot.lane.b32.xlu0 %v1040_v0, %s972_s26  ;;  %421 = vrot.lane.b32.xlu1 %v1040_v0, %s973_s27  ;;  %v873_v1 = vld [vmem:[%s293_s30] sm:$0xff]  ;;  %vm334_vm1 = vcmp.le.s32.totalorder %v1056_v9, %v1054_v8  ;;  %v1065_v14 = vadd.s32 8, %v1054_v8  ;;  %s871_s26 = sshll.u32 %s1173_s18, 4 }
  0x11   : > { %419 = vrot.lane.b32.xlu2 %v873_v1, %s974_s6  ;;  %s308_s29 = scalar_lea.vmem %s1166_s4, %s871_s26 }
  0x12   : > { %vm335_vm3 = vcmp.le.s32.totalorder %v1056_v9, %v1065_v14 }
  0x19   : > { %395 = vrot.lane.b32.xlu2 %v1040_v0, %s975_s7 }
  0x21   : > { %503 = vrot.lane.b32.xlu2 %v1040_v0, %s976_s8 }
  0x29   : > { %585 = vrot.lane.b32.xlu2 %v1040_v0, %s977_s9  ;;  %s318_s9 = scalar_lea.vmem %s1167_s5, %s871_s26 }
  0x31   : > { %501 = vrot.lane.b32.xlu2 %v873_v1, %s978_s10 }
  0x6b   : > { %v420_v6 = vpop.permute.xlu2 %419 }
  0x73   : > { %v396_v21 = vpop.permute.xlu2 %395 }
  0x74   : > { %408 = vmatpush.bf16.msra.mxu1 %v396_v21 }
  0x7b   : > { %v504_v28 = vpop.permute.xlu2 %503 }
  0x7c   : > { %v509_v29 = vsel %vm348_vm0, %v504_v28, 0 }
  0x7d   : > { %518 = vmatpush.bf16.xpose.msrb.mxu1 %v509_v29 }
  0x82   : > { %v347_v2 = vpop.permute.xlu0 %346  ;;  %v422_v3 = vpop.permute.xlu1 %421 }
  0x83   : > { %v353_v4 = vsel %vm348_vm0, %v347_v2, 0  ;;  %v427_v5 = vsel %vm348_vm0, %v422_v3, 0  ;;  %v586_v30 = vpop.permute.xlu2 %585 }
  0x84   : > { %362 = vmatpush.bf16.xpose.msra.mxu0 %v353_v4  ;;  %436 = vmatpush.bf16.xpose.msra.mxu2 %v427_v5  ;;  %v591_v31 = vsel %vm348_vm0, %v586_v30, 0 }
  0x8b   : > { %850 = vmatmul.msk.bf16.vlgmr.msra.gmra.mxu0 %vm348_vm0, %v873_v1  ;;  %852 = vmatmul.msk.bf16.vlgmr.msra.gmra.mxu2 %vm348_vm0, %v420_v6  ;;  %v502_v42 = vpop.permute.xlu2 %501 }
  0x8c   : > { %600 = vmatpush.bf16.xpose.msrb.mxu0 %v591_v31 }
 0x108   : > { %v364_v10 = vpop.f32.mrf.mxu0 }
 0x109   : > { %v369_v11 = vmul.f32 0.35355338, %v364_v10 }
 0x10b   : > { %v371_v12 = vsel %vm334_vm1, %v369_v11, -1e+30 }
 0x10c   : > { %v374_v13 = vsel %vm373_vm2, %v371_v12, -inf }
 0x10d   : > { %375 = vmax.xlane.f32.xlu0 %v374_v13 }
 0x10e   : > { %v438_v19 = vpop.f32.mrf.mxu2 }
 0x10f   : > { %v443_v22 = vmul.f32 0.35355338, %v438_v19 }
 0x110   : > { %v366_v15 = vpop.f32.mrf.mxu0 }
 0x111   : > { %v370_v16 = vmul.f32 0.35355338, %v366_v15  ;;  %v445_v24 = vsel %vm334_vm1, %v443_v22, -1e+30 }
 0x112   : > { %v447_v26 = vsel %vm373_vm2, %v445_v24, -inf }
 0x113   : > { %v372_v17 = vsel %vm335_vm3, %v370_v16, -1e+30  ;;  %448 = vmax.xlane.f32.xlu2 %v447_v26 }
 0x114   : > { %v377_v18 = vsel %vm373_vm2, %v372_v17, -inf }
 0x115   : > { %378 = vmax.xlane.f32.xlu1 %v377_v18 }
 0x116   : > { %v440_v20 = vpop.f32.mrf.mxu2 }
 0x117   : > { %v444_v23 = vmul.f32 0.35355338, %v440_v20 }
 0x119   : > { %v446_v25 = vsel %vm335_vm3, %v444_v23, -1e+30 }
 0x11a   : > { %v450_v27 = vsel %vm373_vm2, %v446_v25, -inf }
 0x121   : > { %468 = vrot.lane.b32.xlu0 %v1040_v0, %s979_s11 }
 0x12e   : > { %583 = vrot.lane.b32.xlu1 %v873_v1, %s980_s12 }
 0x158   : > { %451 = vmax.xlane.f32.xlu1 %v450_v27 }
 0x180   : > { %v376_v32 = vpop.xlane.xlu0 %375 }
 0x181   : > { %v380_v33 = vsub.f32 %v371_v12, %v376_v32 }
 0x183   : > { %v382_v34 = vmul.f32 1.442695, %v380_v33 }
 0x185   : > { %916 = vpow2.f32 %v382_v34 }
 0x186   : > { %v449_v44 = vpop.xlane.xlu2 %448 }
 0x187   : > { %v453_v46 = vsub.f32 %v445_v24, %v449_v44 }
 0x188   : > { %v379_v35 = vpop.xlane.xlu1 %378 }
 0x189   : > { %v381_v36 = vsub.f32 %v372_v17, %v379_v35  ;;  %v455_v48 = vmul.f32 1.442695, %v453_v46 }
 0x18b   : > { %v384_v37 = vmul.f32 1.442695, %v381_v36  ;;  %v1084_v38 = vpop.eup %916 }
 0x18d   : > { %918 = vpow2.f32 %v384_v37  ;;  %v386_v37 = vsel %vm373_vm2, %v1084_v38, 0.0 }
 0x18e   : > { %920 = vpow2.f32 %v455_v48 }
 0x193   : > { %v1086_v39 = vpop.eup %918  ;;  %v469_v43 = vpop.permute.xlu0 %468 }
 0x194   : > { %v394_v40 = vpack.c.bf16 %v1086_v39, %v1084_v38  ;;  %481 = vmatpush.bf16.msra.mxu3 %v469_v43  ;;  %v921_v50 = vpop.eup %920 }
 0x195   : > { %v459_v6 = vsel %vm373_vm2, %v921_v50, 0.0 }
 0x196   : > { %851 = vmatmul.msk.bf16.vlgmr.msra.gmra.mxu1 %vm373_vm2, %v394_v40  ;;  %v389_v40 = vsel %vm373_vm2, %v1086_v39, 0.0 }
 0x1a0   : > { %v584_v41 = vpop.permute.xlu1 %583 }
 0x1a1   : > { %856 = vmatmul.msk.bf16.vlgmr.msrb.gmra.mxu0 %vm348_vm0, %v584_v41 }
 0x1a6   : > { %854 = vmatmul.msk.bf16.vlgmr.msrb.gmra.mxu1 %vm348_vm0, %v502_v42 }
 0x1cb   : > { %v452_v45 = vpop.xlane.xlu1 %451 }
 0x1cc   : > { %v454_v47 = vsub.f32 %v446_v25, %v452_v45 }
 0x1ce   : > { %v457_v49 = vmul.f32 1.442695, %v454_v47 }
 0x1d0   : > { %922 = vpow2.f32 %v457_v49 }
 0x1d6   : > { %v923_v51 = vpop.eup %922 }
 0x1d7   : > { %v467_v52 = vpack.c.bf16 %v923_v51, %v921_v50  ;;  %v462_v10 = vsel %vm373_vm2, %v923_v51, 0.0 }
 0x1d9   : > { %853 = vmatmul.msk.bf16.vlgmr.msra.gmra.mxu3 %vm373_vm2, %v467_v52 }
 0x213   : > { %v1094_v53 = vpop.f32.mrf.mxu1 }
 0x21b   : > { %v1096_v54 = vpop.f32.mrf.mxu1 }
 0x21e   : > { %v602_v55 = vpop.f32.mrf.mxu0 }
 0x21f   : > { %v607_v56 = vmul.f32 0.35355338, %v602_v55 }
 0x221   : > { %v609_v57 = vsel %vm334_vm1, %v607_v56, -1e+30 }
 0x222   : > { %v611_v58 = vsel %vm373_vm2, %v609_v57, -inf }
 0x223   : > { %v520_v59 = vpop.f32.mrf.mxu1  ;;  %612 = vmax.xlane.f32.xlu1 %v611_v58 }
 0x224   : > { %v525_v60 = vmul.f32 0.35355338, %v520_v59 }
 0x226   : > { %v604_v61 = vpop.f32.mrf.mxu0  ;;  %v527_v62 = vsel %vm334_vm1, %v525_v60, -1e+30 }
 0x227   : > { %v608_v63 = vmul.f32 0.35355338, %v604_v61  ;;  %v529_v1 = vsel %vm373_vm2, %v527_v62, -inf }
 0x228   : > { %530 = vmax.xlane.f32.xlu0 %v529_v1 }
 0x229   : > { %v610_v2 = vsel %vm335_vm3, %v608_v63, -1e+30 }
 0x22a   : > { %v614_v3 = vsel %vm373_vm2, %v610_v2, -inf }
 0x22b   : > { %615 = vmax.xlane.f32.xlu2 %v614_v3  ;;  %v522_v4 = vpop.f32.mrf.mxu1 }
 0x22c   : > { %v526_v5 = vmul.f32 0.35355338, %v522_v4 }
 0x22e   : > { %v528_v7 = vsel %vm335_vm3, %v526_v5, -1e+30 }
 0x22f   : > { %v532_v8 = vsel %vm373_vm2, %v528_v7, -inf }
 0x230   : > { %460 = vadd.xlane.f32.xlu0 %v459_v6  ;;  %v876_v6 = vld [vmem:[%s1164_s2 + $0x8] sm:$0xff] }
 0x231   : > { %698 = vmatpush.bf16.msra.mxu1 %v876_v6 }
 0x233   : > { %533 = vmax.xlane.f32.xlu2 %v532_v8 }
 0x23c   : > { %550 = vrot.lane.b32.xlu1 %v1040_v0, %s981_s13 }
 0x24b   : > { %632 = vrot.lane.b32.xlu2 %v1040_v0, %s982_s14 }
 0x25c   : > { %v483_v25 = vpop.f32.mrf.mxu3 }
 0x264   : > { %v485_v43 = vpop.f32.mrf.mxu3 }
 0x266   : > { %463 = vadd.xlane.f32.xlu1 %v462_v10 }
 0x296   : > { %v613_v11 = vpop.xlane.xlu1 %612 }
 0x297   : > { %v617_v15 = vsub.f32 %v609_v57, %v613_v11 }
 0x299   : > { %v619_v17 = vmul.f32 1.442695, %v617_v15  ;;  %v915_v15 = vld [vmem:[%s1165_s3] ss:$0 sm:$0xff] }
 0x29b   : > { %v531_v12 = vpop.xlane.xlu0 %530 }
 0x29c   : > { %v535_v13 = vsub.f32 %v527_v62, %v531_v12 }
 0x29e   : > { %v537_v16 = vmul.f32 1.442695, %v535_v13  ;;  %v616_v9 = vpop.xlane.xlu2 %615 }
 0x29f   : > { %v618_v14 = vsub.f32 %v610_v2, %v616_v9  ;;  %v706_v9 = vld [vmem:[%s308_s29] sm:$0xff] }
 0x2a0   : > { %924 = vpow2.f32 %v537_v16 }
 0x2a1   : > { %v621_v18 = vmul.f32 1.442695, %v618_v14 }
 0x2a3   : > { %v461_v19 = vpop.xlane.xlu0 %460 }
 0x2a4   : > { %926 = vrcp.f32 %v461_v19  ;;  %v707_v19 = vld [vmem:[%s308_s29 + $0x8] sm:$0xff] }
 0x2a5   : > { %928 = vpow2.f32 %v619_v17 }
 0x2a6   : > { %v925_v20 = vpop.eup %924  ;;  %v534_v21 = vpop.xlane.xlu2 %533  ;;  %930 = vpow2.f32 %v621_v18 }
 0x2a7   : > { %v536_v0 = vsub.f32 %v528_v7, %v534_v21  ;;  %v541_v22 = vsel %vm373_vm2, %v925_v20, 0.0  ;;  %v875_v7 = vld [vmem:[%s1164_s2] sm:$0xff] }
 0x2a8   : > { %542 = vadd.xlane.f32.xlu0 %v541_v22  ;;  %699 = vmatpush.bf16.msra.mxu1 %v875_v7 }
 0x2a9   : > { %v539_v23 = vmul.f32 1.442695, %v536_v0 }
 0x2aa   : > { %v927_v24 = vpop.eup %926 }
 0x2ab   : > { %932 = vpow2.f32 %v539_v23  ;;  %v488_v26 = vmul.f32 %v927_v24, %v483_v25  ;;  %v929_v27 = vpop.eup %928 }
 0x2ac   : > { %v931_v28 = vpop.eup %930  ;;  %v623_v31 = vsel %vm373_vm2, %v929_v27, 0.0 }
 0x2ad   : > { %492 = vrot.lane.b32.xlu1 %v488_v26, %s983_s15  ;;  %v631_v32 = vpack.c.bf16 %v931_v28, %v929_v27  ;;  %v626_v36 = vsel %vm373_vm2, %v931_v28, 0.0 }
 0x2ae   : > { %v633_v29 = vpop.permute.xlu2 %632  ;;  %v551_v30 = vpop.permute.xlu1 %550 }
 0x2af   : > { %563 = vmatpush.bf16.msrb.mxu3 %v551_v30  ;;  %645 = vmatpush.bf16.msrb.mxu2 %v633_v29 }
 0x2b0   : > { %624 = vadd.xlane.f32.xlu0 %v623_v31 }
 0x2b1   : > { %v933_v33 = vpop.eup %932 }
 0x2b2   : > { %857 = vmatmul.msk.bf16.vlgmr.msrb.gmra.mxu2 %vm373_vm2, %v631_v32  ;;  %v544_v34 = vsel %vm373_vm2, %v933_v33, 0.0  ;;  %v549_v35 = vpack.c.bf16 %v933_v33, %v925_v20 }
 0x2b3   : > { %545 = vadd.xlane.f32.xlu2 %v544_v34 }
 0x2b4   : > { %855 = vmatmul.msk.bf16.vlgmr.msrb.gmra.mxu3 %vm373_vm2, %v549_v35 }
 0x2b8   : > { %627 = vadd.xlane.f32.xlu0 %v626_v36 }
 0x2c0   : > { %387 = vadd.xlane.f32.xlu0 %v386_v37 }
 0x2c8   : > { %390 = vadd.xlane.f32.xlu0 %v389_v40 }
 0x2d9   : > { %v464_v41 = vpop.xlane.xlu1 %463 }
 0x2da   : > { %934 = vrcp.f32 %v464_v41 }
 0x2e0   : > { %v935_v42 = vpop.eup %934 }
 0x2e1   : > { %v489_v44 = vmul.f32 %v935_v42, %v485_v43 }
 0x2e3   : > { %494 = vrot.lane.b32.xlu0 %v489_v44, %s983_s15 }
 0x31b   : > { %v543_v45 = vpop.xlane.xlu0 %542 }
 0x31f   : > { %v493_v59 = vpop.permute.xlu1 %492 }
 0x323   : > { %v625_v46 = vpop.xlane.xlu0 %624 }
 0x324   : > { %936 = vrcp.f32 %v625_v46 }
 0x325   : > { %938 = vrcp.f32 %v543_v45 }
 0x326   : > { %v546_v38 = vpop.xlane.xlu2 %545 }
 0x32a   : > { %v937_v49 = vpop.eup %936 }
 0x32b   : > { %v628_v47 = vpop.xlane.xlu0 %627  ;;  %v939_v52 = vpop.eup %938 }
 0x333   : > { %v388_v48 = vpop.xlane.xlu0 %387 }
 0x334   : > { %940 = vrcp.f32 %v388_v48 }
 0x335   : > { %v647_v50 = vpop.f32.mrf.mxu2  ;;  %942 = vrcp.f32 %v546_v38 }
 0x336   : > { %v652_v51 = vmul.f32 %v937_v49, %v647_v50  ;;  %944 = vrcp.f32 %v628_v47 }
 0x337   : > { %v565_v39 = vpop.f32.mrf.mxu3 }
 0x338   : > { %v570_v55 = vmul.f32 %v939_v52, %v565_v39  ;;  %656 = vrot.lane.b32.xlu1 %v652_v51, %s984_s16 }
 0x33a   : > { %v941_v56 = vpop.eup %940  ;;  %574 = vrot.lane.b32.xlu2 %v570_v55, %s985_s17 }
 0x33b   : > { %v415_v57 = vmul.f32 %v941_v56, %v1094_v53  ;;  %v391_v58 = vpop.xlane.xlu0 %390  ;;  %v943_v61 = vpop.eup %942 }
 0x33c   : > { %946 = vrcp.f32 %v391_v58  ;;  %v945_v62 = vpop.eup %944 }
 0x33d   : > { %417 = vst.msk [vmem:[#allocation2] sm:$0xff] %vm348_vm0, %v415_v57  ;;  %v649_v60 = vpop.f32.mrf.mxu2 }
 0x33e   : > { %499 = vst.msk [vmem:[#allocation2] sm:$0xff] %vm498_vm4, %v493_v59  ;;  %v653_v1 = vmul.f32 %v945_v62, %v649_v60 }
 0x33f   : > { %v567_v63 = vpop.f32.mrf.mxu3 }
 0x340   : > { %v571_v2 = vmul.f32 %v943_v61, %v567_v63 }
 0x342   : > { %v947_v3 = vpop.eup %946  ;;  %658 = vrot.lane.b32.xlu2 %v653_v1, %s984_s16  ;;  %576 = vrot.lane.b32.xlu0 %v571_v2, %s985_s17 }
 0x343   : > { %v416_v4 = vmul.f32 %v947_v3, %v1096_v54 }
 0x345   : > { %418 = vst.msk [vmem:[#allocation2 + $0x8] sm:$0xff] %vm348_vm0, %v416_v4 }
 0x355   : > { %v495_v53 = vpop.permute.xlu0 %494 }
 0x356   : > { %500 = vst.msk [vmem:[#allocation2 + $0x8] sm:$0xff] %vm498_vm4, %v495_v53 }
 0x394   : > { %v575_v5 = vpop.permute.xlu2 %574 }
 0x395   : > { %581 = vst.msk [vmem:[#allocation2] sm:$0xff] %vm580_vm5, %v575_v5 }
 0x39c   : > { %v659_v10 = vpop.permute.xlu2 %658 }
 0x3aa   : > { %v657_v54 = vpop.permute.xlu1 %656 }
 0x3ab   : > { %663 = vst.msk [vmem:[#allocation2] sm:$0xff] %vm662_vm6, %v657_v54 }
 0x3b2   : > { %v665_v11 = vld [vmem:[#allocation2] sm:$0xff] }
 0x3b4   : > { %v577_v8 = vpop.permute.xlu0 %576 }
 0x3b5   : > { %582 = vst.msk [vmem:[#allocation2 + $0x8] sm:$0xff] %vm580_vm5, %v577_v8 }
 0x3b6   : > { %664 = vst.msk [vmem:[#allocation2 + $0x8] sm:$0xff] %vm662_vm6, %v659_v10 }
 0x3bd   : > { %v666_v12 = vld [vmem:[#allocation2 + $0x8] sm:$0xff] }
 0x3be   : > { %v667_v13 = vpack.c.bf16 %v666_v12, %v665_v11 }
 0x3c0   : > { %866 = vmatmul.msk.bf16.vlgmr.msra.gmra.mxu1 %vm688_vm7, %v667_v13 }
 0x43d   : > { %v701_v16 = vpop.f32.mrf.mxu1 }
 0x43e   : > { %v702_v14 = vadd.f32 %v915_v15, %v701_v16 }
 0x440   : > { %v708_v17 = vadd.f32 %v706_v9, %v702_v14 }
 0x442   : > { %710 = vst.msk [vmem:[%s318_s9] sm:$0xff] %vm688_vm7, %v708_v17 }
 0x445   : > { %v703_v18 = vpop.f32.mrf.mxu1 }
 0x446   : > { %v704_v20 = vadd.f32 %v915_v15, %v703_v18 }
 0x448   : > { %v709_v21 = vadd.f32 %v707_v19, %v704_v20 }
 0x44a   : > { %711 = vst.msk [vmem:[%s318_s9 + $0x8] sm:$0xff] %vm688_vm7, %v709_v21 }
 0x44b PF: > { %s15_s20 = sadd.s32 1, %s970_s20   ;;  %s1168_s18 = smov %s966_s19 }
 0x44c   : > { %p12_p5 = scmp.ge.s32.totalorder %s15_s20, 4   ;;  %s1169_s19 = smov %s1171_s21 }
 0x44e   :  { %14 = sbr.rel (!%p12_p5) target bundleno = 2 (0x2), region = 76 }

// kernel: transformer_forward.11
= control target key start
LH: loop header
LB: loop body
LE: loop exit
PB: predicated region body
PF: predicated region fallthrough
CT: control target
= control target key end

     0   :  { %vm37_vm0 = vcmask 261120   ;;  %v455_v8 = vmov 32.0   ;;  %s629_s0 = inlined_call_operand.vmem [shape: f32[32,32], index: 0, kind: input, shape index: {}]   ;;  %s630_s1 = inlined_call_operand.vmem [shape: f32[1,32], index: 1, kind: input, shape index: {}]   ;;  %s631_s2 = inlined_call_operand.vmem [shape: f32[1,32], index: 2, kind: input, shape index: {}]   ;;  %s632_s4 = inlined_call_operand.vmem [shape: f32[1,128], index: 4, kind: input, shape index: {}]   ;;  %s633_s3 = inlined_call_operand.vmem [shape: bf16[32,128], index: 3, kind: input, shape index: {}]   ;;  %s634_s6 = inlined_call_operand.vmem [shape: f32[1,32], index: 6, kind: input, shape index: {}]   ;;  %s635_s5 = inlined_call_operand.vmem [shape: bf16[128,32], index: 5, kind: input, shape index: {}]   ;;  %s636_s7 = inlined_call_operand.vmem [shape: f32[32,32], index: 7, kind: output, shape index: {}]  }
   0x1   :  { %v500_v0 = vld [vmem:[%s629_s0 + $0x10] sm:$0xff]  ;;  %v505_v1 = vld [vmem:[%s629_s0] sm:$0xff]  ;;  %v514_v4 = vld [vmem:[%s629_s0 + $0x8] sm:$0xff]  ;;  %437 = vrcp.f32 %v455_v8 }
   0x2   :  { %v44_v2 = vsel %vm37_vm0, %v500_v0, 0.0  ;;  %v38_v3 = vsel %vm37_vm0, %v505_v1, 0.0  ;;  %v519_v5 = vld [vmem:[%s629_s0 + $0x18] sm:$0xff]  ;;  %v41_v7 = vsel %vm37_vm0, %v514_v4, 0.0  ;;  %v414_v41 = vld [vmem:[%s633_s3 + $0x8] sm:$0xff]  ;;  %v413_v44 = vld [vmem:[%s633_s3] sm:$0xff] }
   0x3   :  { %45 = vadd.xlane.f32.xlu1 %v44_v2  ;;  %39 = vadd.xlane.f32.xlu0 %v38_v3  ;;  %v47_v6 = vsel %vm37_vm0, %v519_v5, 0.0  ;;  %v433_v63 = vld [vmem:[%s630_s1] ss:$0 sm:$0xff] }
   0x4   :  { %194 = vmatpush.bf16.msra.mxu0 %v414_v41  ;;  %v434_v8 = vld [vmem:[%s631_s2] ss:$0 sm:$0xff]  ;;  %v418_v41 = vld [vmem:[%s635_s5 + $0x18] sm:$0xff] }
   0x7   :  { %v438_v9 = vpop.eup %437 }
   0x8   :  { %v51_v10 = vmul.f32 32.0, %v438_v9  ;;  %vm55_vm1 = vweird.f32 %v438_v9  ;;  %195 = vmatpush.bf16.msra.mxu0 %v413_v44  ;;  %v415_v44 = vld [vmem:[%s635_s5] sm:$0xff] }
   0xa   :  { %v52_v11 = vsub.f32 1.0, %v51_v10 }
   0xb   :  { %48 = vadd.xlane.f32.xlu1 %v47_v6  ;;  %42 = vadd.xlane.f32.xlu0 %v41_v7 }
   0xc   :  { %v53_v12 = vmul.f32 %v438_v9, %v52_v11 }
   0xe   :  { %v54_v13 = vadd.f32 %v438_v9, %v53_v12 }
  0x10   :  { %v56_v14 = vsel %vm55_vm1, %v438_v9, %v54_v13 }
  0x76   :  { %v46_v15 = vpop.xlane.xlu1 %45  ;;  %v40_v16 = vpop.xlane.xlu0 %39 }
  0x77   :  { %v59_v17 = vmul.f32 %v56_v14, %v46_v15  ;;  %v57_v18 = vmul.f32 %v56_v14, %v40_v16 }
  0x79   :  { %v526_v19 = vsub.f32 %v500_v0, %v59_v17  ;;  %v529_v20 = vsub.f32 %v505_v1, %v57_v18 }
  0x7b   :  { %v67_v21 = vmul.f32 %v526_v19, %v526_v19  ;;  %v65_v22 = vmul.f32 %v529_v20, %v529_v20 }
  0x7d   :  { %v75_v23 = vsel %vm37_vm0, %v67_v21, 0.0  ;;  %v69_v24 = vsel %vm37_vm0, %v65_v22, 0.0 }
  0x7e   :  { %v49_v25 = vpop.xlane.xlu1 %48  ;;  %76 = vadd.xlane.f32.xlu0 %v75_v23  ;;  %70 = vadd.xlane.f32.xlu2 %v69_v24  ;;  %v43_v26 = vpop.xlane.xlu0 %42 }
  0x7f   :  { %v60_v27 = vmul.f32 %v56_v14, %v49_v25  ;;  %v58_v28 = vmul.f32 %v56_v14, %v43_v26 }
  0x81   :  { %v538_v29 = vsub.f32 %v519_v5, %v60_v27  ;;  %v541_v30 = vsub.f32 %v514_v4, %v58_v28 }
  0x83   :  { %v68_v31 = vmul.f32 %v538_v29, %v538_v29  ;;  %v66_v32 = vmul.f32 %v541_v30, %v541_v30 }
  0x85   :  { %v78_v33 = vsel %vm37_vm0, %v68_v31, 0.0  ;;  %v72_v34 = vsel %vm37_vm0, %v66_v32, 0.0 }
  0x86   :  { %79 = vadd.xlane.f32.xlu1 %v78_v33  ;;  %73 = vadd.xlane.f32.xlu2 %v72_v34 }
  0xf1   :  { %v71_v35 = vpop.xlane.xlu2 %70  ;;  %v77_v36 = vpop.xlane.xlu0 %76 }
  0xf2   :  { %v81_v37 = vmul.f32 %v71_v35, %v56_v14  ;;  %v83_v38 = vmul.f32 %v77_v36, %v56_v14 }
  0xf4   :  { %v85_v39 = vadd.f32 1e-05, %v81_v37  ;;  %v87_v40 = vadd.f32 1e-05, %v83_v38 }
  0xf6   :  { %439 = vrsqrt.f32 %v85_v39  ;;  %vm115_vm2 = vweird.f32 %v87_v40  ;;  %vm95_vm5 = vweird.f32 %v85_v39 }
  0xf7   :  { %441 = vrsqrt.f32 %v87_v40 }
  0xf9   :  { %v80_v42 = vpop.xlane.xlu1 %79  ;;  %v74_v43 = vpop.xlane.xlu2 %73 }
  0xfa   :  { %v84_v45 = vmul.f32 %v80_v42, %v56_v14  ;;  %v82_v46 = vmul.f32 %v74_v43, %v56_v14  ;;  %v417_v42 = vld [vmem:[%s635_s5 + $0x10] sm:$0xff]  ;;  %v416_v43 = vld [vmem:[%s635_s5 + $0x8] sm:$0xff] }
  0xfc   :  { %v440_v47 = vpop.eup %439  ;;  %v88_v48 = vadd.f32 1e-05, %v84_v45  ;;  %v86_v49 = vadd.f32 1e-05, %v82_v46  ;;  %v435_v45 = vld [vmem:[%s632_s4] ss:$0 sm:$0xff] }
  0xfd   :  { %v442_v50 = vpop.eup %441  ;;  %v90_v51 = vmul.f32 %v440_v47, %v85_v39  ;;  %vm96_vm4 = vweird.f32 %v440_v47  ;;  %v420_v39 = vld [vmem:[%s635_s5 + $0x28] sm:$0xff] }
  0xfe   :  { %v110_v52 = vmul.f32 %v442_v50, %v87_v40  ;;  %443 = vrsqrt.f32 %v88_v48  ;;  %vm116_vm3 = vweird.f32 %v442_v50  ;;  %vm97_vm7 = vmor %vm95_vm5, %vm96_vm4  ;;  %vm125_vm8 = vweird.f32 %v88_v48  ;;  %v419_v40 = vld [vmem:[%s635_s5 + $0x20] sm:$0xff] }
  0xff   :  { %v91_v53 = vmul.f32 %v440_v47, %v90_v51  ;;  %445 = vrsqrt.f32 %v86_v49  ;;  %vm117_vm6 = vmor %vm115_vm2, %vm116_vm3  ;;  %vm105_vm12 = vweird.f32 %v86_v49 }
 0x100   :  { %v111_v54 = vmul.f32 %v442_v50, %v110_v52 }
 0x101   :  { %v92_v55 = vmul.f32 0.5, %v91_v53 }
 0x102   :  { %v112_v56 = vmul.f32 0.5, %v111_v54 }
 0x103   :  { %v93_v57 = vsub.f32 1.5, %v92_v55 }
 0x104   :  { %v444_v58 = vpop.eup %443  ;;  %v113_v59 = vsub.f32 1.5, %v112_v56 }
 0x105   :  { %v446_v60 = vpop.eup %445  ;;  %v94_v61 = vmul.f32 %v440_v47, %v93_v57  ;;  %v120_v62 = vmul.f32 %v444_v58, %v88_v48  ;;  %vm126_vm9 = vweird.f32 %v444_v58 }
 0x106   :  { %v114_v2 = vmul.f32 %v442_v50, %v113_v59  ;;  %v100_v3 = vmul.f32 %v446_v60, %v86_v49  ;;  %vm127_vm10 = vmor %vm125_vm8, %vm126_vm9  ;;  %vm106_vm11 = vweird.f32 %v446_v60 }
 0x107   :  { %v98_v6 = vsel %vm97_vm7, %v440_v47, %v94_v61  ;;  %v121_v7 = vmul.f32 %v444_v58, %v120_v62  ;;  %vm107_vm13 = vmor %vm105_vm12, %vm106_vm11 }
 0x108   :  { %v129_v9 = vmul.f32 %v98_v6, %v529_v20  ;;  %v118_v10 = vsel %vm117_vm6, %v442_v50, %v114_v2  ;;  %v101_v11 = vmul.f32 %v446_v60, %v100_v3 }
 0x109   :  { %v131_v12 = vmul.f32 %v118_v10, %v526_v19  ;;  %v122_v13 = vmul.f32 0.5, %v121_v7 }
 0x10a   :  { %v136_v14 = vmul.f32 %v433_v63, %v129_v9  ;;  %v102_v15 = vmul.f32 0.5, %v101_v11 }
 0x10b   :  { %v138_v16 = vmul.f32 %v433_v63, %v131_v12  ;;  %v123_v17 = vsub.f32 1.5, %v122_v13 }
 0x10c   :  { %v143_v18 = vadd.f32 %v434_v8, %v136_v14  ;;  %v103_v21 = vsub.f32 1.5, %v102_v15 }
 0x10d   :  { %v145_v22 = vadd.f32 %v434_v8, %v138_v16  ;;  %v124_v23 = vmul.f32 %v444_v58, %v123_v17 }
 0x10e   :  { %147 = vst.msk [vmem:[#allocation2] sm:$0xff] %vm37_vm0, %v143_v18  ;;  %v104_v20 = vmul.f32 %v446_v60, %v103_v21 }
 0x10f   :  { %149 = vst.msk [vmem:[#allocation2 + $0x10] sm:$0xff] %vm37_vm0, %v145_v22  ;;  %v128_v19 = vsel %vm127_vm10, %v444_v58, %v124_v23 }
 0x110   :  { %v132_v24 = vmul.f32 %v128_v19, %v538_v29  ;;  %v108_v25 = vsel %vm107_vm13, %v446_v60, %v104_v20  ;;  %v422_v29 = vld [vmem:[%s635_s5 + $0x38] sm:$0xff] }
 0x111   :  { %v130_v26 = vmul.f32 %v108_v25, %v541_v30  ;;  %313 = vmatpush.bf16.msra.mxu1 %v422_v29  ;;  %v421_v30 = vld [vmem:[%s635_s5 + $0x30] sm:$0xff]  ;;  %423 = vmatpush.bf16.msra.mxu2 %v422_v29 }
 0x112   :  { %v139_v27 = vmul.f32 %v433_v63, %v132_v24 }
 0x113   :  { %v137_v28 = vmul.f32 %v433_v63, %v130_v26  ;;  %v456_v63 = vmov 0.0  }
 0x114   :  { %v146_v31 = vadd.f32 %v434_v8, %v139_v27  ;;  %151 = vst.msk [vmem:[#allocation3] sm:$0xff] %vm37_vm0, %v456_v63 }
 0x115   :  { %v144_v32 = vadd.f32 %v434_v8, %v137_v28  ;;  %v155_v33 = vld [vmem:[#allocation2] sm:$0xff]  ;;  %314 = vmatpush.bf16.msra.mxu1 %v421_v30  ;;  %424 = vmatpush.bf16.msra.mxu2 %v421_v30  ;;  %152 = vst.msk [vmem:[#allocation3 + $0x8] sm:$0xff] %vm37_vm0, %v456_v63 }
 0x116   :  { %150 = vst.msk [vmem:[#allocation2 + $0x18] sm:$0xff] %vm37_vm0, %v146_v31  ;;  %v157_v37 = vld [vmem:[#allocation2 + $0x10] sm:$0xff]  ;;  %v436_v30 = vld [vmem:[%s634_s6] ss:$0 sm:$0xff] }
 0x117   :  { %148 = vst.msk [vmem:[#allocation2 + $0x8] sm:$0xff] %vm37_vm0, %v144_v32 }
 0x118   :  { %153 = vst.msk [vmem:[#allocation3 + $0x10] sm:$0xff] %vm37_vm0, %v456_v63 }
 0x119   :  { %315 = vmatpush.bf16.msra.mxu1 %v420_v39  ;;  %425 = vmatpush.bf16.msra.mxu2 %v420_v39  ;;  %154 = vst.msk [vmem:[#allocation3 + $0x18] sm:$0xff] %vm37_vm0, %v456_v63 }
 0x11d   :  { %v158_v36 = vld [vmem:[#allocation2 + $0x18] sm:$0xff]  ;;  %316 = vmatpush.bf16.msra.mxu1 %v419_v40  ;;  %426 = vmatpush.bf16.msra.mxu2 %v419_v40 }
 0x11e   :  { %v156_v34 = vld [vmem:[#allocation2 + $0x8] sm:$0xff]  ;;  %v160_v38 = vpack.c.bf16 %v158_v36, %v157_v37 }
 0x11f   :  { %v159_v35 = vpack.c.bf16 %v156_v34, %v155_v33 }
 0x121   :  { %379 = vmatmul.msk.bf16.vlgmr.msra.gmra.mxu0 %vm37_vm0, %v159_v35  ;;  %317 = vmatpush.bf16.msra.mxu1 %v418_v41  ;;  %v243_v35 = vld [vmem:[#allocation3] sm:$0xff] }
 0x122   :  { %427 = vmatpush.bf16.msra.mxu2 %v418_v41 }
 0x125   :  { %318 = vmatpush.bf16.msra.mxu1 %v417_v42 }
 0x126   :  { %428 = vmatpush.bf16.msra.mxu2 %v417_v42 }
 0x129   :  { %319 = vmatpush.bf16.msra.mxu1 %v416_v43 }
 0x12a   :  { %429 = vmatpush.bf16.msra.mxu2 %v416_v43 }
 0x12d   :  { %320 = vmatpush.bf16.msra.mxu1 %v415_v44 }
 0x12e   :  { %430 = vmatpush.bf16.msra.mxu2 %v415_v44 }
 0x131   :  { %380 = vmatmul.msk.bf16.gmra.mxu0 %vm37_vm0, %v160_v38  ;;  %v244_v38 = vld [vmem:[#allocation3 + $0x8] sm:$0xff] }
 0x19e   :  { %v197_v46 = vpop.f32.mrf.mxu0 }
 0x19f   :  { %v198_v47 = vadd.f32 %v435_v45, %v197_v46 }
 0x1a1   :  { %v211_v48 = vmul.f32 0.044715, %v198_v47  ;;  %v207_v13 = vmul.f32 0.5, %v198_v47 }
 0x1a3   :  { %v215_v49 = vmul.f32 %v211_v48, %v198_v47  ;;  %v246_v48 = vld [vmem:[#allocation3 + $0x18] sm:$0xff] }
 0x1a5   :  { %v219_v50 = vmul.f32 %v215_v49, %v198_v47 }
 0x1a6   :  { %v199_v51 = vpop.f32.mrf.mxu0 }
 0x1a7   :  { %v200_v52 = vadd.f32 %v435_v45, %v199_v51  ;;  %v223_v53 = vadd.f32 %v219_v50, %v198_v47 }
 0x1a9   :  { %v212_v54 = vmul.f32 0.044715, %v200_v52  ;;  %v227_v56 = vmul.f32 0.7978846, %v223_v53  ;;  %v208_v14 = vmul.f32 0.5, %v200_v52 }
 0x1ab   :  { %v216_v55 = vmul.f32 %v212_v54, %v200_v52  ;;  %447 = vtanh.f32 %v227_v56 }
 0x1ad   :  { %v220_v57 = vmul.f32 %v216_v55, %v200_v52 }
 0x1ae   :  { %v202_v58 = vpop.f32.mrf.mxu0 }
 0x1af   :  { %v203_v59 = vadd.f32 %v435_v45, %v202_v58  ;;  %v224_v60 = vadd.f32 %v220_v57, %v200_v52 }
 0x1b1   :  { %v213_v61 = vmul.f32 0.044715, %v203_v59  ;;  %v228_v62 = vmul.f32 0.7978846, %v224_v60  ;;  %v448_v3 = vpop.eup %447  ;;  %v209_v27 = vmul.f32 0.5, %v203_v59 }
 0x1b2   :  { %v235_v10 = vadd.f32 1.0, %v448_v3 }
 0x1b3   :  { %449 = vtanh.f32 %v228_v62  ;;  %v217_v2 = vmul.f32 %v213_v61, %v203_v59 }
 0x1b4   :  { %v239_v18 = vmul.f32 %v235_v10, %v207_v13 }
 0x1b5   :  { %v221_v6 = vmul.f32 %v217_v2, %v203_v59 }
 0x1b6   :  { %v204_v7 = vpop.f32.mrf.mxu0 }
 0x1b7   :  { %v205_v8 = vadd.f32 %v435_v45, %v204_v7  ;;  %v225_v9 = vadd.f32 %v221_v6, %v203_v59  ;;  %v245_v45 = vld [vmem:[#allocation3 + $0x10] sm:$0xff] }
 0x1b9   :  { %v450_v11 = vpop.eup %449  ;;  %v214_v12 = vmul.f32 0.044715, %v205_v8  ;;  %v229_v17 = vmul.f32 0.7978846, %v225_v9  ;;  %v210_v28 = vmul.f32 0.5, %v205_v8 }
 0x1ba   :  { %v236_v15 = vadd.f32 1.0, %v450_v11 }
 0x1bb   :  { %v218_v16 = vmul.f32 %v214_v12, %v205_v8  ;;  %451 = vtanh.f32 %v229_v17 }
 0x1bc   :  { %v240_v21 = vmul.f32 %v236_v15, %v208_v14 }
 0x1bd   :  { %v222_v22 = vmul.f32 %v218_v16, %v205_v8 }
 0x1be   :  { %v247_v23 = vpack.c.bf16 %v240_v21, %v239_v18 }
 0x1bf   :  { %v226_v20 = vadd.f32 %v222_v22, %v205_v8 }
 0x1c0   :  { %321 = vmatmul.bf16.vlgmr.msra.gmra.mxu1 %v247_v23 }
 0x1c1   :  { %v230_v19 = vmul.f32 0.7978846, %v226_v20  ;;  %v452_v24 = vpop.eup %451 }
 0x1c2   :  { %v237_v25 = vadd.f32 1.0, %v452_v24 }
 0x1c3   :  { %453 = vtanh.f32 %v230_v19 }
 0x1c4   :  { %v241_v32 = vmul.f32 %v237_v25, %v209_v27 }
 0x1c9   :  { %v454_v26 = vpop.eup %453 }
 0x1ca   :  { %v238_v31 = vadd.f32 1.0, %v454_v26 }
 0x1cc   :  { %v242_v33 = vmul.f32 %v238_v31, %v210_v28 }
 0x1ce   :  { %v248_v34 = vpack.c.bf16 %v242_v33, %v241_v32 }
 0x1d0   :  { %326 = vmatmul.bf16.vlgmr.msra.gmra.mxu2 %v248_v34 }
 0x23d   :  { %v322_v36 = vpop.f32.mrf.mxu1 }
 0x23e   :  { %v332_v37 = vadd.f32 %v322_v36, %v243_v35 }
 0x240   :  { %336 = vst.msk [vmem:[#allocation3] sm:$0xff] %vm37_vm0, %v332_v37 }
 0x245   :  { %v324_v29 = vpop.f32.mrf.mxu1 }
 0x246   :  { %v333_v39 = vadd.f32 %v324_v29, %v244_v38 }
 0x247   :  { %v347_v40 = vld [vmem:[#allocation3] sm:$0xff] }
 0x248   :  { %v351_v41 = vadd.f32 %v347_v40, %v505_v1  ;;  %337 = vst.msk [vmem:[#allocation3 + $0x8] sm:$0xff] %vm37_vm0, %v333_v39 }
 0x24a   :  { %v359_v42 = vadd.f32 %v436_v30, %v351_v41 }
 0x24c   :  { %363 = vst.msk [vmem:[%s636_s7] sm:$0xff] %vm37_vm0, %v359_v42 }
 0x24f   :  { %v348_v43 = vld [vmem:[#allocation3 + $0x8] sm:$0xff] }
 0x250   :  { %v352_v44 = vadd.f32 %v348_v43, %v514_v4 }
 0x252   :  { %v360_v46 = vadd.f32 %v436_v30, %v352_v44 }
 0x253   :  { %v327_v47 = vpop.f32.mrf.mxu2 }
 0x254   :  { %364 = vst.msk [vmem:[%s636_s7 + $0x8] sm:$0xff] %vm37_vm0, %v360_v46  ;;  %v334_v1 = vadd.f32 %v327_v47, %v245_v45 }
 0x256   :  { %338 = vst.msk [vmem:[#allocation3 + $0x10] sm:$0xff] %vm37_vm0, %v334_v1 }
 0x25b   :  { %v329_v49 = vpop.f32.mrf.mxu2 }
 0x25c   :  { %v335_v50 = vadd.f32 %v329_v49, %v246_v48 }
 0x25d   :  { %v349_v51 = vld [vmem:[#allocation3 + $0x10] sm:$0xff] }
 0x25e   :  { %v353_v52 = vadd.f32 %v349_v51, %v500_v0  ;;  %339 = vst.msk [vmem:[#allocation3 + $0x18] sm:$0xff] %vm37_vm0, %v335_v50 }
 0x260   :  { %v361_v4 = vadd.f32 %v436_v30, %v353_v52 }
 0x262   :  { %365 = vst.msk [vmem:[%s636_s7 + $0x10] sm:$0xff] %vm37_vm0, %v361_v4 }
 0x265   :  { %v350_v53 = vld [vmem:[#allocation3 + $0x18] sm:$0xff] }
 0x266   :  { %v354_v54 = vadd.f32 %v350_v53, %v519_v5 }
 0x268   :  { %v362_v55 = vadd.f32 %v436_v30, %v354_v54 }
 0x26a   :  { %366 = vst.msk [vmem:[%s636_s7 + $0x18] sm:$0xff] %vm37_vm0, %v362_v55 }

// kernel: transformer_forward.15
= control target key start
LH: loop header
LB: loop body
LE: loop exit
PB: predicated region body
PF: predicated region fallthrough
CT: control target
= control target key end

     0   :  { %vm28_vm0 = vcmask 261120   ;;  %v190_v8 = vmov 32.0   ;;  %vm166_vm14 = vcmask 7168   ;;  %s289_s0 = inlined_call_operand.vmem [shape: f32[32,32], index: 0, kind: input, shape index: {}]   ;;  %s290_s1 = inlined_call_operand.vmem [shape: f32[1,32], index: 1, kind: input, shape index: {}]   ;;  %s291_s2 = inlined_call_operand.vmem [shape: f32[1,32], index: 2, kind: input, shape index: {}]   ;;  %s292_s3 = inlined_call_operand.vmem [shape: f32[1,32], index: 3, kind: input, shape index: {}]   ;;  %s293_s4 = inlined_call_operand.<no memory space> [shape: f32[1,1], index: 4, kind: input, shape index: {}]   ;;  %s294_s5 = inlined_call_operand.vmem [shape: f32[32,1], index: 5, kind: output, shape index: {}]  }
   0x1   :  { %v24_v0 = vld [vmem:[%s289_s0 + $0x10] sm:$0xff]  ;;  %v22_v1 = vld [vmem:[%s289_s0] sm:$0xff]  ;;  %v25_v4 = vld [vmem:[%s289_s0 + $0x18] sm:$0xff]  ;;  %180 = vrcp.f32 %v190_v8  ;;  %v10_v45 = vstv %s293_s4 }
   0x2   :  { %v35_v2 = vsel %vm28_vm0, %v24_v0, 0.0  ;;  %v29_v3 = vsel %vm28_vm0, %v22_v1, 0.0  ;;  %v23_v5 = vld [vmem:[%s289_s0 + $0x8] sm:$0xff]  ;;  %v38_v6 = vsel %vm28_vm0, %v25_v4, 0.0  ;;  %11 = vst [vmem:[#allocation2] sm:$0x1] %v10_v45 }
   0x3   :  { %36 = vadd.xlane.f32.xlu1 %v35_v2  ;;  %30 = vadd.xlane.f32.xlu0 %v29_v3  ;;  %v32_v7 = vsel %vm28_vm0, %v23_v5, 0.0 }
   0x7   :  { %v181_v9 = vpop.eup %180 }
   0x8   :  { %v42_v10 = vmul.f32 32.0, %v181_v9  ;;  %vm46_vm1 = vweird.f32 %v181_v9 }
   0xa   :  { %v43_v11 = vsub.f32 1.0, %v42_v10 }
   0xb   :  { %39 = vadd.xlane.f32.xlu1 %v38_v6  ;;  %33 = vadd.xlane.f32.xlu0 %v32_v7  ;;  %v177_v6 = vld [vmem:[%s291_s2] ss:$0 sm:$0xff] }
   0xc   :  { %v44_v12 = vmul.f32 %v181_v9, %v43_v11  ;;  %v178_v11 = vld [vmem:[%s292_s3] ss:$0 sm:$0xff] }
   0xe   :  { %v45_v13 = vadd.f32 %v181_v9, %v44_v12 }
  0x10   :  { %v47_v14 = vsel %vm46_vm1, %v181_v9, %v45_v13 }
  0x76   :  { %v37_v15 = vpop.xlane.xlu1 %36  ;;  %v31_v16 = vpop.xlane.xlu0 %30 }
  0x77   :  { %v50_v17 = vmul.f32 %v47_v14, %v37_v15  ;;  %v48_v18 = vmul.f32 %v47_v14, %v31_v16 }
  0x79   :  { %v237_v19 = vsub.f32 %v24_v0, %v50_v17  ;;  %v239_v20 = vsub.f32 %v22_v1, %v48_v18  ;;  %v176_v0 = vld [vmem:[%s290_s1] ss:$0 sm:$0xff] }
  0x7b   :  { %v58_v21 = vmul.f32 %v237_v19, %v237_v19  ;;  %v56_v22 = vmul.f32 %v239_v20, %v239_v20 }
  0x7d   :  { %v66_v23 = vsel %vm28_vm0, %v58_v21, 0.0  ;;  %v60_v24 = vsel %vm28_vm0, %v56_v22, 0.0 }
  0x7e   :  { %v40_v25 = vpop.xlane.xlu1 %39  ;;  %67 = vadd.xlane.f32.xlu0 %v66_v23  ;;  %61 = vadd.xlane.f32.xlu2 %v60_v24  ;;  %v34_v26 = vpop.xlane.xlu0 %33 }
  0x7f   :  { %v51_v27 = vmul.f32 %v47_v14, %v40_v25  ;;  %v49_v28 = vmul.f32 %v47_v14, %v34_v26 }
  0x81   :  { %v247_v29 = vsub.f32 %v25_v4, %v51_v27  ;;  %v249_v30 = vsub.f32 %v23_v5, %v49_v28 }
  0x83   :  { %v59_v31 = vmul.f32 %v247_v29, %v247_v29  ;;  %v57_v32 = vmul.f32 %v249_v30, %v249_v30 }
  0x85   :  { %v69_v33 = vsel %vm28_vm0, %v59_v31, 0.0  ;;  %v63_v34 = vsel %vm28_vm0, %v57_v32, 0.0 }
  0x86   :  { %70 = vadd.xlane.f32.xlu1 %v69_v33  ;;  %64 = vadd.xlane.f32.xlu2 %v63_v34 }
  0xf1   :  { %v62_v35 = vpop.xlane.xlu2 %61  ;;  %v68_v36 = vpop.xlane.xlu0 %67 }
  0xf2   :  { %v72_v37 = vmul.f32 %v62_v35, %v47_v14  ;;  %v74_v38 = vmul.f32 %v68_v36, %v47_v14 }
  0xf4   :  { %v76_v39 = vadd.f32 1e-05, %v72_v37  ;;  %v78_v40 = vadd.f32 1e-05, %v74_v38  ;;  %v179_v37 = vld [vmem:[#allocation2] ss:$0 sm:$0xff] }
  0xf6   :  { %182 = vrsqrt.f32 %v76_v39  ;;  %vm86_vm4 = vweird.f32 %v76_v39  ;;  %vm106_vm6 = vweird.f32 %v78_v40 }
  0xf7   :  { %184 = vrsqrt.f32 %v78_v40 }
  0xf9   :  { %v71_v41 = vpop.xlane.xlu1 %70  ;;  %v65_v42 = vpop.xlane.xlu2 %64 }
  0xfa   :  { %v75_v43 = vmul.f32 %v71_v41, %v47_v14  ;;  %v73_v44 = vmul.f32 %v65_v42, %v47_v14 }
  0xfc   :  { %v183_v46 = vpop.eup %182  ;;  %v79_v47 = vadd.f32 1e-05, %v75_v43  ;;  %v77_v48 = vadd.f32 1e-05, %v73_v44 }
  0xfd   :  { %v185_v49 = vpop.eup %184  ;;  %v81_v50 = vmul.f32 %v183_v46, %v76_v39  ;;  %vm87_vm2 = vweird.f32 %v183_v46 }
  0xfe   :  { %v101_v51 = vmul.f32 %v185_v49, %v78_v40  ;;  %186 = vrsqrt.f32 %v79_v47  ;;  %vm107_vm3 = vweird.f32 %v185_v49  ;;  %vm88_vm5 = vmor %vm86_vm4, %vm87_vm2  ;;  %vm116_vm10 = vweird.f32 %v79_v47 }
  0xff   :  { %v82_v52 = vmul.f32 %v183_v46, %v81_v50  ;;  %188 = vrsqrt.f32 %v77_v48  ;;  %vm108_vm7 = vmor %vm106_vm6, %vm107_vm3  ;;  %vm96_vm12 = vweird.f32 %v77_v48 }
 0x100   :  { %v102_v53 = vmul.f32 %v185_v49, %v101_v51 }
 0x101   :  { %v83_v54 = vmul.f32 0.5, %v82_v52 }
 0x102   :  { %v103_v55 = vmul.f32 0.5, %v102_v53 }
 0x103   :  { %v84_v56 = vsub.f32 1.5, %v83_v54 }
 0x104   :  { %v187_v57 = vpop.eup %186  ;;  %v104_v58 = vsub.f32 1.5, %v103_v55 }
 0x105   :  { %v189_v59 = vpop.eup %188  ;;  %v85_v60 = vmul.f32 %v183_v46, %v84_v56  ;;  %v111_v61 = vmul.f32 %v187_v57, %v79_v47  ;;  %vm117_vm8 = vweird.f32 %v187_v57 }
 0x106   :  { %v105_v62 = vmul.f32 %v185_v49, %v104_v58  ;;  %v91_v63 = vmul.f32 %v189_v59, %v77_v48  ;;  %vm97_vm9 = vweird.f32 %v189_v59  ;;  %vm118_vm11 = vmor %vm116_vm10, %vm117_vm8 }
 0x107   :  { %v89_v1 = vsel %vm88_vm5, %v183_v46, %v85_v60  ;;  %v112_v2 = vmul.f32 %v187_v57, %v111_v61  ;;  %vm98_vm13 = vmor %vm96_vm12, %vm97_vm9 }
 0x108   :  { %v109_v3 = vsel %vm108_vm7, %v185_v49, %v105_v62  ;;  %v92_v4 = vmul.f32 %v189_v59, %v91_v63  ;;  %v120_v5 = vmul.f32 %v89_v1, %v239_v20 }
 0x109   :  { %v113_v7 = vmul.f32 0.5, %v112_v2  ;;  %v122_v8 = vmul.f32 %v109_v3, %v237_v19 }
 0x10a   :  { %v93_v9 = vmul.f32 0.5, %v92_v4  ;;  %v127_v10 = vmul.f32 %v176_v0, %v120_v5 }
 0x10b   :  { %v114_v12 = vsub.f32 1.5, %v113_v7  ;;  %v129_v13 = vmul.f32 %v176_v0, %v122_v8 }
 0x10c   :  { %v94_v14 = vsub.f32 1.5, %v93_v9  ;;  %v134_v15 = vadd.f32 %v177_v6, %v127_v10 }
 0x10d   :  { %v115_v16 = vmul.f32 %v187_v57, %v114_v12  ;;  %v136_v17 = vadd.f32 %v177_v6, %v129_v13 }
 0x10e   :  { %v95_v18 = vmul.f32 %v189_v59, %v94_v14  ;;  %v142_v20 = vmul.f32 %v178_v11, %v134_v15 }
 0x10f   :  { %v119_v19 = vsel %vm118_vm11, %v187_v57, %v115_v16  ;;  %v144_v21 = vmul.f32 %v178_v11, %v136_v17 }
 0x110   :  { %v99_v22 = vsel %vm98_vm13, %v189_v59, %v95_v18  ;;  %v146_v23 = vsel %vm28_vm0, %v142_v20, 0.0  ;;  %v123_v24 = vmul.f32 %v119_v19, %v247_v29 }
 0x111   :  { %147 = vadd.xlane.f32.xlu2 %v146_v23  ;;  %v152_v25 = vsel %vm28_vm0, %v144_v21, 0.0  ;;  %v121_v26 = vmul.f32 %v99_v22, %v249_v30 }
 0x112   :  { %153 = vadd.xlane.f32.xlu1 %v152_v25  ;;  %v130_v27 = vmul.f32 %v176_v0, %v123_v24 }
 0x113   :  { %v128_v28 = vmul.f32 %v176_v0, %v121_v26 }
 0x114   :  { %v137_v31 = vadd.f32 %v177_v6, %v130_v27 }
 0x115   :  { %v135_v32 = vadd.f32 %v177_v6, %v128_v28 }
 0x116   :  { %v145_v33 = vmul.f32 %v178_v11, %v137_v31 }
 0x117   :  { %v143_v34 = vmul.f32 %v178_v11, %v135_v32 }
 0x118   :  { %v155_v35 = vsel %vm28_vm0, %v145_v33, 0.0 }
 0x119   :  { %156 = vadd.xlane.f32.xlu2 %v155_v35  ;;  %v149_v36 = vsel %vm28_vm0, %v143_v34, 0.0 }
 0x11a   :  { %150 = vadd.xlane.f32.xlu0 %v149_v36 }
 0x184   :  { %v148_v29 = vpop.xlane.xlu2 %147 }
 0x185   :  { %v162_v38 = vadd.f32 %v179_v37, %v148_v29  ;;  %v154_v39 = vpop.xlane.xlu1 %153 }
 0x186   :  { %v164_v40 = vadd.f32 %v179_v37, %v154_v39 }
 0x187   :  { %167 = vst.msk [vmem:[%s294_s5] sm:$0xff] %vm166_vm14, %v162_v38 }
 0x188   :  { %169 = vst.msk [vmem:[%s294_s5 + $0x10] sm:$0xff] %vm166_vm14, %v164_v40 }
 0x18c   :  { %v157_v30 = vpop.xlane.xlu2 %156 }
 0x18d   :  { %v165_v41 = vadd.f32 %v179_v37, %v157_v30  ;;  %v151_v42 = vpop.xlane.xlu0 %150 }
 0x18e   :  { %v163_v43 = vadd.f32 %v179_v37, %v151_v42 }
 0x18f   :  { %170 = vst.msk [vmem:[%s294_s5 + $0x18] sm:$0xff] %vm166_vm14, %v165_v41 }
 0x190   :  { %168 = vst.msk [vmem:[%s294_s5 + $0x8] sm:$0xff] %vm166_vm14, %v163_v43 }

</bundles_post_ra>
